<compile_context>
chip_gen: v7x
topology: tpu7x:2x2x1
jax: 0.10.0
libtpu: 0.0.40
codegen_flags: <defaults>
</compile_context>

<pallas_src>
import functools

import numpy as np
import jax
import jax.numpy as jnp
from jax import lax
from jax.experimental import pallas as pl
from jax.experimental.pallas import tpu as pltpu


_LANE = 128


def _round_up(x, m):
    return (x + m - 1) // m * m


def _vmem_budget():
    """(tile budget, vmem_limit_bytes), generation aware."""
    cap = 64 * 1024 * 1024                     # conservative default (v7x)
    try:
        info = pltpu.get_tpu_info()
        cap = int(getattr(info, "vmem_capacity_bytes", cap))
    except Exception:
        pass
    if cap >= 96 * 1024 * 1024:                # 128 MiB parts: v5e / v6e
        return 64 * 1024 * 1024, 100 * 1024 * 1024
    return 26 * 1024 * 1024, 46 * 1024 * 1024  # v7x: 64 MiB physical


# ---------------------------------------------------------------------------
# Kernels
# ---------------------------------------------------------------------------
def _conv_body(xm_ref, xh_ref, w_ref, offs):
    """sum_k  X[off_k : off_k + TILE_M, :] @ W[k]   (f32 MXU accumulation).

    xm_ref is the main (TILE_M, Cin) tile, xh_ref a small halo block with the
    rows just past it.  The shifted slices start at arbitrary (non sublane
    aligned) row offsets; the shift is done on an f32 copy (the most robust
    relayout path) and cast back to the MXU input dtype, which is lossless for
    the +/-1 binary activations.
    """
    tm = xm_ref.shape[0]
    xcat = jnp.concatenate([xm_ref[...], xh_ref[...]], axis=0)
    need_shift = any(o != 0 for o in offs)
    xcat32 = xcat.astype(jnp.float32) if need_shift else None
    acc = None
    for k, off in enumerate(offs):
        if off == 0:
            xs = xcat[:tm, :]
        else:
            xs = xcat32[off:off + tm, :].astype(xcat.dtype)
        p = jnp.dot(xs, w_ref[k], preferred_element_type=jnp.float32)
        acc = p if acc is None else acc + p
    return acc


def _apply_act(y, activation, prelu_alpha):
    if activation == 'relu':
        return jnp.maximum(y, 0.0)
    if activation == 'prelu':
        # TODO(synk): PReLU slope is learnable in torch; baked at init (0.25).
        return jnp.where(y > 0, y, prelu_alpha * y)
    return y


def _conv_stats_kernel(xm_ref, xh_ref, w_ref, mask_ref, y_ref, sum_ref, sq_ref,
                       *, offs):
    """Pass 1 (bn=True): conv, store y tile (bf16 when binary) and per-tile
    masked per-channel (sum, sumsq) partials (row axis stays 'parallel')."""
    acc = _conv_body(xm_ref, xh_ref, w_ref, offs)            # f32 (TILE_M, Cp)
    y_ref[...] = acc.astype(y_ref.dtype)
    ym = acc * mask_ref[...]                                  # drop invalid rows
    s = jnp.sum(ym, axis=0, keepdims=True)
    q = jnp.sum(ym * acc, axis=0, keepdims=True)
    sum_ref[...] = jnp.broadcast_to(s, sum_ref.shape)
    sq_ref[...] = jnp.broadcast_to(q, sq_ref.shape)


def _conv_act_kernel(xm_ref, xh_ref, w_ref, scale_ref, o_ref,
                     *, offs, activation, prelu_alpha, apply_scale):
    """bn=False path: conv (+ per-channel weight scale) + activation, fused."""
    y = _conv_body(xm_ref, xh_ref, w_ref, offs)
    if apply_scale:
        y = y * scale_ref[...]
    o_ref[...] = _apply_act(y, activation, prelu_alpha)


def _bn_act_kernel(y_ref, a_ref, b_ref, o_ref, *, activation, prelu_alpha):
    """Pass 2 (bn=True): y*bn_scale + bn_shift (weight scale folded in) + act."""
    y = y_ref[...].astype(jnp.float32) * a_ref[...] + b_ref[...]
    o_ref[...] = _apply_act(y, activation, prelu_alpha)


# ---------------------------------------------------------------------------
# Wrapper
# ---------------------------------------------------------------------------
def basic_block_forward(x_nchw, weight_oihw, gamma, beta, *,
                        ks=3, stride=1, pad=1, bn=True, activation='',
                        binary=False, eps=1e-5, prelu_alpha=0.25, tile_m=None):
    N, Cin, H, W = x_nchw.shape
    Cout = weight_oihw.shape[0]
    KH = KW = ks
    Hout = (H + 2 * pad - KH) // stride + 1
    Wout = (W + 2 * pad - KW) // stride + 1
    M_real = N * Hout * Wout
    Hp, Wp = H + 2 * pad, W + 2 * pad

    x_dtype = jnp.bfloat16 if binary else jnp.float32
    # bf16 intermediate is exact for the (unscaled, integer valued) binary conv
    # output as long as |y| <= 256; non-binary keeps f32.
    y_dtype = jnp.bfloat16 if binary else jnp.float32
    x_item = 2 if binary else 4
    y_item = 2 if y_dtype == jnp.bfloat16 else 4

    # --- BinaryActivation + spatial zero-padding (NHWC) ---------------------
    x_nhwc = jnp.transpose(x_nchw, (0, 2, 3, 1)).astype(jnp.float32)
    x_act = jnp.sign(x_nhwc) if binary else x_nhwc
    xp = jnp.pad(x_act, ((0, 0), (pad, pad), (pad, pad), (0, 0)))

    # --- HardBinaryConv weight ----------------------------------------------
    Wf = weight_oihw.astype(jnp.float32)
    if binary:
        scale_vec = jnp.mean(jnp.abs(Wf), axis=(1, 2, 3))     # (Cout,)
        Wq = jnp.sign(Wf)
    else:
        scale_vec = jnp.ones((Cout,), jnp.float32)
        Wq = Wf
    wt = jnp.transpose(Wq, (2, 3, 1, 0))                      # (KH,KW,Cin,Cout)

    C_pad = _round_up(Cout, _LANE)

    if stride == 1:
        # "wide" formulation: one output row per padded input position; the
        # KH*KW taps are constant flat-row shifts, so no im2col is needed.
        Cin_eff = Cin
        offs = tuple(kh * Wp + kw for kh in range(KH) for kw in range(KW))
        W_eff = wt.reshape(KH * KW, Cin, Cout)
        M_wide = N * Hp * Wp
        X2 = xp.reshape(M_wide, Cin)
        halo = (KH - 1) * Wp + (KW - 1)
    else:
        # general-stride fallback: wrapper-side im2col, single dot (offs=(0,)).
        Cin_eff = KH * KW * Cin
        offs = (0,)
        W_eff = wt.reshape(1, Cin_eff, Cout)
        M_wide = M_real
        cols = []
        for kh in range(KH):
            for kw in range(KW):
                patch = xp[:, kh:kh + Hout * stride:stride,
                              kw:kw + Wout * stride:stride, :]
                cols.append(patch.reshape(M_real, Cin))
        X2 = jnp.concatenate(cols, axis=1)
        halo = 0

    # Pad the contraction dim for friendlier sublane packing (16 for bf16).
    c_align = 16 if binary else 8
    Cin_p = _round_up(Cin_eff, c_align)
    X2 = jnp.pad(X2.astype(x_dtype), ((0, 0), (0, Cin_p - Cin_eff)))
    W_eff = jnp.pad(W_eff.astype(x_dtype),
                    ((0, 0), (0, Cin_p - Cin_eff), (0, C_pad - Cout)))
    KK = W_eff.shape[0]
    halo_pad = max(256, _round_up(halo, 256))

    # --- tile size: real itemsizes, x2 pipeline buffers, gen-aware budget ----
    budget, vmem_limit = _vmem_budget()
    Cin_v = _round_up(Cin_p, _LANE)                # VMEM lane padding
    fixed = (2 * KK * _round_up(Cin_p, 8) * C_pad * x_item    # weight (2 bufs)
             + 2 * halo_pad * Cin_v * x_item                  # halo block
             + 8 * 8 * C_pad * 4                              # stats / vectors
             + (2 << 20))                                     # headroom
    p1 = 2 * Cin_v * x_item + 2 * _LANE * 4 + 2 * C_pad * y_item
    p2 = 2 * C_pad * y_item + 2 * C_pad * 4
    pnb = 2 * Cin_v * x_item + 2 * C_pad * 4
    per_row = max(p1, p2) if bn else pnb
    if tile_m is None:
        tile_m = (budget - fixed) // per_row
    tile_m = int(tile_m)
    tile_m = min(tile_m, 8192, _round_up(M_wide, halo_pad))
    tile_m = max(halo_pad, tile_m // halo_pad * halo_pad)

    M_pad = _round_up(M_wide, tile_m)
    n_tiles = M_pad // tile_m
    ratio = tile_m // halo_pad
    X2 = jnp.pad(X2, ((0, M_pad + halo_pad - M_wide), (0, 0)))

    # --- specs ---------------------------------------------------------------
    xm_spec = pl.BlockSpec((tile_m, Cin_p), lambda i: (i, 0))
    xh_spec = pl.BlockSpec((halo_pad, Cin_p), lambda i: ((i + 1) * ratio, 0))
    w_spec = pl.BlockSpec((KK, Cin_p, C_pad), lambda i: (0, 0, 0))
    vec_spec = pl.BlockSpec((1, C_pad), lambda i: (0, 0))
    mask_spec = pl.BlockSpec((tile_m, 1), lambda i: (i, 0))
    row_spec = pl.BlockSpec((tile_m, C_pad), lambda i: (i, 0))
    stat_spec = pl.BlockSpec((8, C_pad), lambda i: (i, 0))

    cparams = pltpu.CompilerParams(dimension_semantics=("parallel",),
                                   vmem_limit_bytes=vmem_limit)
    cost = pl.CostEstimate(
        flops=2 * M_pad * KK * Cin_p * C_pad,
        transcendentals=0,
        bytes_accessed=((M_pad + halo_pad) * Cin_p * x_item
                        + KK * Cin_p * C_pad * x_item
                        + M_pad * C_pad * (y_item if bn else 4)))

    if bn:
        # Row-validity mask: drops the "wide" garbage rows + tail padding from
        # the BatchNorm batch statistics (training-mode stats over M_real).
        r = jnp.arange(M_pad)
        valid = r < M_wide
        if stride == 1:
            hi = (r % (Hp * Wp)) // Wp
            wi = r % Wp
            valid = valid & (hi < Hout) & (wi < Wout)
        mask = valid.astype(jnp.float32).reshape(M_pad, 1)

        y2d, sum_p, sq_p = pl.pallas_call(
            functools.partial(_conv_stats_kernel, offs=offs),
            out_shape=(jax.ShapeDtypeStruct((M_pad, C_pad), y_dtype),
                       jax.ShapeDtypeStruct((n_tiles * 8, C_pad), jnp.float32),
                       jax.ShapeDtypeStruct((n_tiles * 8, C_pad), jnp.float32)),
            grid_spec=pltpu.PrefetchScalarGridSpec(
                num_scalar_prefetch=0, grid=(n_tiles,),
                in_specs=[xm_spec, xh_spec, w_spec, mask_spec],
                out_specs=(row_spec, stat_spec, stat_spec)),
            compiler_params=cparams, cost_estimate=cost,
        )(X2, X2, W_eff, mask)

        # Reduce per-tile partials; fold the weight scale into the BN math so
        # pass 2 applies it for free.  Zero rows/cols contribute 0 to sums.
        ysum = sum_p.reshape(n_tiles, 8, C_pad)[:, 0, :].sum(axis=0)
        ysq = sq_p.reshape(n_tiles, 8, C_pad)[:, 0, :].sum(axis=0)
        scale_p = jnp.pad(scale_vec, (0, C_pad - Cout))
        cnt = float(M_real)
        mean = scale_p * ysum / cnt
        ey2 = scale_p * scale_p * ysq / cnt
        # TODO(synk): E[y^2]-mean^2 can cancel when |mean| >> std; switch to a
        # shifted / Welford accumulation for very large activation scales.
        var = jnp.maximum(ey2 - mean * mean, 0.0)
        inv = lax.rsqrt(var + eps)
        g = jnp.pad(gamma.astype(jnp.float32), (0, C_pad - Cout))
        b = jnp.pad(beta.astype(jnp.float32), (0, C_pad - Cout))
        bn_a = (g * inv * scale_p).reshape(1, C_pad)
        bn_b = (b - mean * g * inv).reshape(1, C_pad)

        out2d = pl.pallas_call(
            functools.partial(_bn_act_kernel, activation=activation,
                              prelu_alpha=prelu_alpha),
            out_shape=jax.ShapeDtypeStruct((M_pad, C_pad), jnp.float32),
            grid_spec=pltpu.PrefetchScalarGridSpec(
                num_scalar_prefetch=0, grid=(n_tiles,),
                in_specs=[row_spec, vec_spec, vec_spec],
                out_specs=row_spec),
            compiler_params=cparams,
        )(y2d, bn_a, bn_b)
    else:
        scale_in = jnp.pad(scale_vec, (0, C_pad - Cout)).reshape(1, C_pad)
        out2d = pl.pallas_call(
            functools.partial(_conv_act_kernel, offs=offs,
                              activation=activation, prelu_alpha=prelu_alpha,
                              apply_scale=bool(binary)),
            out_shape=jax.ShapeDtypeStruct((M_pad, C_pad), jnp.float32),
            grid_spec=pltpu.PrefetchScalarGridSpec(
                num_scalar_prefetch=0, grid=(n_tiles,),
                in_specs=[xm_spec, xh_spec, w_spec, vec_spec],
                out_specs=row_spec),
            compiler_params=cparams, cost_estimate=cost,
        )(X2, X2, W_eff, scale_in)

    # Crop the wide/padded rows and go back to NCHW (module interface).
    if stride == 1:
        wide = out2d[:M_wide].reshape(N, Hp, Wp, C_pad)
        y_nhwc = wide[:, :Hout, :Wout, :Cout]
    else:
        y_nhwc = out2d[:M_real, :Cout].reshape(N, Hout, Wout, Cout)
    # TODO(synk): return NHWC (or fuse crop+transpose into pass 2's out_spec)
    # when the consumer accepts it; this transpose is an extra HBM round trip.
    return jnp.transpose(y_nhwc, (0, 3, 1, 2))


# ---------------------------------------------------------------------------
# Pure-JAX reference for verification.
# ---------------------------------------------------------------------------
def basic_block_reference(x, weight, gamma, beta, *, ks=3, stride=1, pad=1,
                          bn=True, activation='', binary=False,
                          eps=1e-5, prelu_alpha=0.25):
    xa = jnp.sign(x) if binary else x
    wq = weight
    if binary:
        scale = jnp.mean(jnp.abs(weight), axis=(1, 2, 3), keepdims=True)
        wq = scale * jnp.sign(weight)
    y = lax.conv_general_dilated(
        xa.astype(jnp.float32), wq.astype(jnp.float32),
        window_strides=(stride, stride),
        padding=[(pad, pad), (pad, pad)],
        dimension_numbers=('NCHW', 'OIHW', 'NCHW'))
    if bn:
        m = jnp.mean(y, axis=(0, 2, 3), keepdims=True)
        v = jnp.mean((y - m) ** 2, axis=(0, 2, 3), keepdims=True)
        y = (y - m) / jnp.sqrt(v + eps)
        y = y * gamma.reshape(1, -1, 1, 1) + beta.reshape(1, -1, 1, 1)
    if activation == 'relu':
        y = jnp.maximum(y, 0.0)
    elif activation == 'prelu':
        y = jnp.where(y > 0, y, prelu_alpha * y)
    return y


if __name__ == "__main__":
    key = jax.random.PRNGKey(0)
    kx, kw, kg, kb = jax.random.split(key, 4)

    N, Cin, H, W = 2, 4, 16, 16
    Cout, ks, pad = 8, 3, 1

    x = jax.random.normal(kx, (N, Cin, H, W), jnp.float32)
    # HardBinaryConv.__init__: weights = torch.rand(...) * 0.001
    weight = jax.random.uniform(kw, (Cout, Cin, ks, ks), jnp.float32) * 0.001
    gamma = jax.random.uniform(kg, (Cout,), jnp.float32, 0.5, 1.5)
    beta = jax.random.normal(kb, (Cout,), jnp.float32) * 0.1

    configs = [
        # (input, config, forced tile_m)
        (x, dict(bn=True, activation='relu', binary=True, stride=1), 256),   # multi-tile BN
        (x, dict(bn=True, activation='', binary=False, stride=1), None),     # module defaults
        (x[:, :, :15, :15],                                                  # ragged spatial
         dict(bn=True, activation='prelu', binary=True, stride=1), 256),
        (x, dict(bn=False, activation='relu', binary=True, stride=1), None), # fused no-BN path
        (x, dict(bn=True, activation='relu', binary=False, stride=2), None), # im2col fallback
    ]
    for xin, cfg, tm in configs:
        out = basic_block_forward(xin, weight, gamma, beta, ks=ks, pad=pad,
                                  tile_m=tm, **cfg)
        out = jax.block_until_ready(out)
        ref = basic_block_reference(xin, weight, gamma, beta, ks=ks, pad=pad,
                                    **cfg)
        assert out.shape == ref.shape
        np.testing.assert_allclose(np.asarray(out), np.asarray(ref),
                                   rtol=1e-4, atol=1e-4)

    print("KERNEL_OK")
</pallas_src>

<mosaic_0001>
module attributes {stable_mosaic.version = 11 : i64} {
  func.func @_conv_stats_kernel(%arg0: i32, %arg1: memref<256x16xbf16, #tpu.memory_space<vmem>>, %arg2: memref<256x16xbf16, #tpu.memory_space<vmem>>, %arg3: memref<9x16x128xbf16, #tpu.memory_space<vmem>>, %arg4: memref<256x1xf32, #tpu.memory_space<vmem>>, %arg5: memref<256x128xbf16, #tpu.memory_space<vmem>>, %arg6: memref<8x128xf32, #tpu.memory_space<vmem>>, %arg7: memref<8x128xf32, #tpu.memory_space<vmem>>) attributes {dimension_semantics = [#tpu.dimension_semantics<parallel>], iteration_bounds = array<i64: 3>, scalar_prefetch = 0 : i64, scratch_operands = 0 : i64, tpu.core_type = #tpu.core_type<tc>, window_params = [{transform_indices = @transform_0, window_bounds = array<i64: 256, 16>}, {transform_indices = @transform_1, window_bounds = array<i64: 256, 16>}, {pipeline_mode = #tpu.pipeline_mode<synchronous>, transform_indices = @transform_2, window_bounds = array<i64: 9, 16, 128>}, {transform_indices = @transform_3, window_bounds = array<i64: 256, 1>}, {transform_indices = @transform_4, window_bounds = array<i64: 256, 128>}, {transform_indices = @transform_5, window_bounds = array<i64: 8, 128>}, {transform_indices = @transform_6, window_bounds = array<i64: 8, 128>}]} {
    %c0 = arith.constant 0 : index
    %c0_0 = arith.constant 0 : index
    %0 = vector.load %arg1[%c0, %c0_0] : memref<256x16xbf16, #tpu.memory_space<vmem>>, vector<256x16xbf16>
    %c0_1 = arith.constant 0 : index
    %c0_2 = arith.constant 0 : index
    %1 = vector.load %arg2[%c0_1, %c0_2] : memref<256x16xbf16, #tpu.memory_space<vmem>>, vector<256x16xbf16>
    %2 = tpu.concatenate %0, %1 in 0 : vector<256x16xbf16>, vector<256x16xbf16> -> vector<512x16xbf16>
    %3 = arith.extf %2 : vector<512x16xbf16> to vector<512x16xf32>
    %4 = vector.extract_strided_slice %2 {offsets = [0, 0], sizes = [256, 16], strides = [1, 1]} : vector<512x16xbf16> to vector<256x16xbf16>
    %c0_3 = arith.constant 0 : index
    %c0_4 = arith.constant 0 : index
    %c0_5 = arith.constant 0 : index
    %5 = vector.load %arg3[%c0_3, %c0_4, %c0_5] : memref<9x16x128xbf16, #tpu.memory_space<vmem>>, vector<1x16x128xbf16>
    %6 = vector.shape_cast %5 : vector<1x16x128xbf16> to vector<16x128xbf16>
    %cst = arith.constant dense<0.000000e+00> : vector<256x128xf32>
    %7 = tpu.matmul %4, %6, %cst {dimension_numbers = #tpu.dot_dimension_numbers<[1], [0], [0], [1], [0, 0, 1, 1], [], []>} : vector<256x16xbf16>, vector<16x128xbf16>, vector<256x128xf32> -> vector<256x128xf32>
    %8 = vector.extract_strided_slice %3 {offsets = [1, 0], sizes = [256, 16], strides = [1, 1]} : vector<512x16xf32> to vector<256x16xf32>
    %9 = arith.truncf %8 : vector<256x16xf32> to vector<256x16xbf16>
    %c1 = arith.constant 1 : index
    %c0_6 = arith.constant 0 : index
    %c0_7 = arith.constant 0 : index
    %10 = vector.load %arg3[%c1, %c0_6, %c0_7] : memref<9x16x128xbf16, #tpu.memory_space<vmem>>, vector<1x16x128xbf16>
    %11 = vector.shape_cast %10 : vector<1x16x128xbf16> to vector<16x128xbf16>
    %cst_8 = arith.constant dense<0.000000e+00> : vector<256x128xf32>
    %12 = tpu.matmul %9, %11, %cst_8 {dimension_numbers = #tpu.dot_dimension_numbers<[1], [0], [0], [1], [0, 0, 1, 1], [], []>} : vector<256x16xbf16>, vector<16x128xbf16>, vector<256x128xf32> -> vector<256x128xf32>
    %13 = arith.addf %7, %12 : vector<256x128xf32>
    %14 = vector.extract_strided_slice %3 {offsets = [2, 0], sizes = [256, 16], strides = [1, 1]} : vector<512x16xf32> to vector<256x16xf32>
    %15 = arith.truncf %14 : vector<256x16xf32> to vector<256x16xbf16>
    %c2 = arith.constant 2 : index
    %c0_9 = arith.constant 0 : index
    %c0_10 = arith.constant 0 : index
    %16 = vector.load %arg3[%c2, %c0_9, %c0_10] : memref<9x16x128xbf16, #tpu.memory_space<vmem>>, vector<1x16x128xbf16>
    %17 = vector.shape_cast %16 : vector<1x16x128xbf16> to vector<16x128xbf16>
    %cst_11 = arith.constant dense<0.000000e+00> : vector<256x128xf32>
    %18 = tpu.matmul %15, %17, %cst_11 {dimension_numbers = #tpu.dot_dimension_numbers<[1], [0], [0], [1], [0, 0, 1, 1], [], []>} : vector<256x16xbf16>, vector<16x128xbf16>, vector<256x128xf32> -> vector<256x128xf32>
    %19 = arith.addf %13, %18 : vector<256x128xf32>
    %20 = vector.extract_strided_slice %3 {offsets = [18, 0], sizes = [256, 16], strides = [1, 1]} : vector<512x16xf32> to vector<256x16xf32>
    %21 = arith.truncf %20 : vector<256x16xf32> to vector<256x16xbf16>
    %c3 = arith.constant 3 : index
    %c0_12 = arith.constant 0 : index
    %c0_13 = arith.constant 0 : index
    %22 = vector.load %arg3[%c3, %c0_12, %c0_13] : memref<9x16x128xbf16, #tpu.memory_space<vmem>>, vector<1x16x128xbf16>
    %23 = vector.shape_cast %22 : vector<1x16x128xbf16> to vector<16x128xbf16>
    %cst_14 = arith.constant dense<0.000000e+00> : vector<256x128xf32>
    %24 = tpu.matmul %21, %23, %cst_14 {dimension_numbers = #tpu.dot_dimension_numbers<[1], [0], [0], [1], [0, 0, 1, 1], [], []>} : vector<256x16xbf16>, vector<16x128xbf16>, vector<256x128xf32> -> vector<256x128xf32>
    %25 = arith.addf %19, %24 : vector<256x128xf32>
    %26 = vector.extract_strided_slice %3 {offsets = [19, 0], sizes = [256, 16], strides = [1, 1]} : vector<512x16xf32> to vector<256x16xf32>
    %27 = arith.truncf %26 : vector<256x16xf32> to vector<256x16xbf16>
    %c4 = arith.constant 4 : index
    %c0_15 = arith.constant 0 : index
    %c0_16 = arith.constant 0 : index
    %28 = vector.load %arg3[%c4, %c0_15, %c0_16] : memref<9x16x128xbf16, #tpu.memory_space<vmem>>, vector<1x16x128xbf16>
    %29 = vector.shape_cast %28 : vector<1x16x128xbf16> to vector<16x128xbf16>
    %cst_17 = arith.constant dense<0.000000e+00> : vector<256x128xf32>
    %30 = tpu.matmul %27, %29, %cst_17 {dimension_numbers = #tpu.dot_dimension_numbers<[1], [0], [0], [1], [0, 0, 1, 1], [], []>} : vector<256x16xbf16>, vector<16x128xbf16>, vector<256x128xf32> -> vector<256x128xf32>
    %31 = arith.addf %25, %30 : vector<256x128xf32>
    %32 = vector.extract_strided_slice %3 {offsets = [20, 0], sizes = [256, 16], strides = [1, 1]} : vector<512x16xf32> to vector<256x16xf32>
    %33 = arith.truncf %32 : vector<256x16xf32> to vector<256x16xbf16>
    %c5 = arith.constant 5 : index
    %c0_18 = arith.constant 0 : index
    %c0_19 = arith.constant 0 : index
    %34 = vector.load %arg3[%c5, %c0_18, %c0_19] : memref<9x16x128xbf16, #tpu.memory_space<vmem>>, vector<1x16x128xbf16>
    %35 = vector.shape_cast %34 : vector<1x16x128xbf16> to vector<16x128xbf16>
    %cst_20 = arith.constant dense<0.000000e+00> : vector<256x128xf32>
    %36 = tpu.matmul %33, %35, %cst_20 {dimension_numbers = #tpu.dot_dimension_numbers<[1], [0], [0], [1], [0, 0, 1, 1], [], []>} : vector<256x16xbf16>, vector<16x128xbf16>, vector<256x128xf32> -> vector<256x128xf32>
    %37 = arith.addf %31, %36 : vector<256x128xf32>
    %38 = vector.extract_strided_slice %3 {offsets = [36, 0], sizes = [256, 16], strides = [1, 1]} : vector<512x16xf32> to vector<256x16xf32>
    %39 = arith.truncf %38 : vector<256x16xf32> to vector<256x16xbf16>
    %c6 = arith.constant 6 : index
    %c0_21 = arith.constant 0 : index
    %c0_22 = arith.constant 0 : index
    %40 = vector.load %arg3[%c6, %c0_21, %c0_22] : memref<9x16x128xbf16, #tpu.memory_space<vmem>>, vector<1x16x128xbf16>
    %41 = vector.shape_cast %40 : vector<1x16x128xbf16> to vector<16x128xbf16>
    %cst_23 = arith.constant dense<0.000000e+00> : vector<256x128xf32>
    %42 = tpu.matmul %39, %41, %cst_23 {dimension_numbers = #tpu.dot_dimension_numbers<[1], [0], [0], [1], [0, 0, 1, 1], [], []>} : vector<256x16xbf16>, vector<16x128xbf16>, vector<256x128xf32> -> vector<256x128xf32>
    %43 = arith.addf %37, %42 : vector<256x128xf32>
    %44 = vector.extract_strided_slice %3 {offsets = [37, 0], sizes = [256, 16], strides = [1, 1]} : vector<512x16xf32> to vector<256x16xf32>
    %45 = arith.truncf %44 : vector<256x16xf32> to vector<256x16xbf16>
    %c7 = arith.constant 7 : index
    %c0_24 = arith.constant 0 : index
    %c0_25 = arith.constant 0 : index
    %46 = vector.load %arg3[%c7, %c0_24, %c0_25] : memref<9x16x128xbf16, #tpu.memory_space<vmem>>, vector<1x16x128xbf16>
    %47 = vector.shape_cast %46 : vector<1x16x128xbf16> to vector<16x128xbf16>
    %cst_26 = arith.constant dense<0.000000e+00> : vector<256x128xf32>
    %48 = tpu.matmul %45, %47, %cst_26 {dimension_numbers = #tpu.dot_dimension_numbers<[1], [0], [0], [1], [0, 0, 1, 1], [], []>} : vector<256x16xbf16>, vector<16x128xbf16>, vector<256x128xf32> -> vector<256x128xf32>
    %49 = arith.addf %43, %48 : vector<256x128xf32>
    %50 = vector.extract_strided_slice %3 {offsets = [38, 0], sizes = [256, 16], strides = [1, 1]} : vector<512x16xf32> to vector<256x16xf32>
    %51 = arith.truncf %50 : vector<256x16xf32> to vector<256x16xbf16>
    %c8 = arith.constant 8 : index
    %c0_27 = arith.constant 0 : index
    %c0_28 = arith.constant 0 : index
    %52 = vector.load %arg3[%c8, %c0_27, %c0_28] : memref<9x16x128xbf16, #tpu.memory_space<vmem>>, vector<1x16x128xbf16>
    %53 = vector.shape_cast %52 : vector<1x16x128xbf16> to vector<16x128xbf16>
    %cst_29 = arith.constant dense<0.000000e+00> : vector<256x128xf32>
    %54 = tpu.matmul %51, %53, %cst_29 {dimension_numbers = #tpu.dot_dimension_numbers<[1], [0], [0], [1], [0, 0, 1, 1], [], []>} : vector<256x16xbf16>, vector<16x128xbf16>, vector<256x128xf32> -> vector<256x128xf32>
    %55 = arith.addf %49, %54 : vector<256x128xf32>
    %56 = arith.truncf %55 : vector<256x128xf32> to vector<256x128xbf16>
    %c0_30 = arith.constant 0 : index
    %c0_31 = arith.constant 0 : index
    %57 = vector.load %arg5[%c0_30, %c0_31] : memref<256x128xbf16, #tpu.memory_space<vmem>>, vector<256x128xbf16>
    tpu.vector_store %arg5[%c0_30, %c0_31], %56 {strides = array<i32>} : memref<256x128xbf16, #tpu.memory_space<vmem>>, vector<256x128xbf16>,
    %c0_32 = arith.constant 0 : index
    %c0_33 = arith.constant 0 : index
    %58 = vector.load %arg4[%c0_32, %c0_33] : memref<256x1xf32, #tpu.memory_space<vmem>>, vector<256x1xf32>
    %59 = vector.broadcast %58 : vector<256x1xf32> to vector<256x128xf32>
    %60 = arith.mulf %55, %59 : vector<256x128xf32>
    %cst_34 = arith.constant dense<0.000000e+00> : vector<128xf32>
    %61 = vector.multi_reduction <add>, %60, %cst_34 [0] : vector<256x128xf32> to vector<128xf32>
    %62 = vector.shape_cast %61 : vector<128xf32> to vector<1x128xf32>
    %63 = arith.mulf %60, %55 : vector<256x128xf32>
    %cst_35 = arith.constant dense<0.000000e+00> : vector<128xf32>
    %64 = vector.multi_reduction <add>, %63, %cst_35 [0] : vector<256x128xf32> to vector<128xf32>
    %65 = vector.shape_cast %64 : vector<128xf32> to vector<1x128xf32>
    %66 = vector.shape_cast %62 : vector<1x128xf32> to vector<1x128xf32>
    %67 = vector.broadcast %66 : vector<1x128xf32> to vector<8x128xf32>
    %c0_36 = arith.constant 0 : index
    %c0_37 = arith.constant 0 : index
    %68 = vector.load %arg6[%c0_36, %c0_37] : memref<8x128xf32, #tpu.memory_space<vmem>>, vector<8x128xf32>
    tpu.vector_store %arg6[%c0_36, %c0_37], %67 {strides = array<i32>} : memref<8x128xf32, #tpu.memory_space<vmem>>, vector<8x128xf32>,
    %69 = vector.shape_cast %65 : vector<1x128xf32> to vector<1x128xf32>
    %70 = vector.broadcast %69 : vector<1x128xf32> to vector<8x128xf32>
    %c0_38 = arith.constant 0 : index
    %c0_39 = arith.constant 0 : index
    %71 = vector.load %arg7[%c0_38, %c0_39] : memref<8x128xf32, #tpu.memory_space<vmem>>, vector<8x128xf32>
    tpu.vector_store %arg7[%c0_38, %c0_39], %70 {strides = array<i32>} : memref<8x128xf32, #tpu.memory_space<vmem>>, vector<8x128xf32>,
    return
  }
  func.func @transform_0(%arg0: i32) -> (i32, i32) {
    %c0_i32 = arith.constant 0 : i32
    %c0_i32_0 = arith.constant 0 : i32
    return %arg0, %c0_i32 : i32, i32
  }
  func.func @transform_1(%arg0: i32) -> (i32, i32) {
    %c1_i32 = arith.constant 1 : i32
    %0 = arith.addi %arg0, %c1_i32 : i32
    %c1_i32_0 = arith.constant 1 : i32
    %1 = arith.muli %0, %c1_i32_0 : i32
    %c0_i32 = arith.constant 0 : i32
    %c0_i32_1 = arith.constant 0 : i32
    return %1, %c0_i32 : i32, i32
  }
  func.func @transform_2(%arg0: i32) -> (i32, i32, i32) {
    %c0_i32 = arith.constant 0 : i32
    %c0_i32_0 = arith.constant 0 : i32
    %c0_i32_1 = arith.constant 0 : i32
    %c0_i32_2 = arith.constant 0 : i32
    return %c0_i32, %c0_i32_0, %c0_i32_1 : i32, i32, i32
  }
  func.func @transform_3(%arg0: i32) -> (i32, i32) {
    %c0_i32 = arith.constant 0 : i32
    %c0_i32_0 = arith.constant 0 : i32
    return %arg0, %c0_i32 : i32, i32
  }
  func.func @transform_4(%arg0: i32) -> (i32, i32) {
    %c0_i32 = arith.constant 0 : i32
    %c0_i32_0 = arith.constant 0 : i32
    return %arg0, %c0_i32 : i32, i32
  }
  func.func @transform_5(%arg0: i32) -> (i32, i32) {
    %c0_i32 = arith.constant 0 : i32
    %c0_i32_0 = arith.constant 0 : i32
    return %arg0, %c0_i32 : i32, i32
  }
  func.func @transform_6(%arg0: i32) -> (i32, i32) {
    %c0_i32 = arith.constant 0 : i32
    %c0_i32_0 = arith.constant 0 : i32
    return %arg0, %c0_i32 : i32, i32
  }
}

</mosaic_0001>

<bundles_post_ra>
// kernel: tpu_custom_call.1
= control target key start
LH: loop header
LB: loop body
LE: loop exit
PB: predicated region body
PF: predicated region fallthrough
CT: control target
= control target key end

     0   :  { %12 = vsyncpa [#allocation3], 0  ;;  %s6191_s0 = inlined_call_operand.vmem [shape: bf16[1024,16], index: 0, kind: input, shape index: {}]   ;;  %s6192_s1 = inlined_call_operand.vmem [shape: bf16[1024,16], index: 1, kind: input, shape index: {}]   ;;  %s6193_s2 = inlined_call_operand.vmem [shape: bf16[9,16,128], index: 2, kind: input, shape index: {}]   ;;  %s6194_s3 = inlined_call_operand.vmem [shape: f32[768,1], index: 3, kind: input, shape index: {}]   ;;  %s6195_s4 = inlined_call_operand.hbm [shape: bf16[768,128], index: 4, kind: output, shape index: {0}]   ;;  %s6196_s5 = inlined_call_operand.hbm [shape: f32[24,128], index: 5, kind: output, shape index: {1}]   ;;  %s6197_s6 = inlined_call_operand.hbm [shape: f32[24,128], index: 6, kind: output, shape index: {2}]  }
   0x1   :  { %14 = vsyncpa [#allocation3 + $0x1], 0 }
   0x2   :  { %15 = vsyncpa [#allocation5], 0 }
   0x3   :  { %17 = vsyncpa [#allocation5 + $0x1], 0  ;;  %s5092_s21 = smov 0   ;;  %s5094_s22 = smov 0  }
   0x4   :  { %s5096_s23 = smov 0   ;;  %s5098_s24 = smov 0  }
   0x5 LB: > { %s5113_s25 = sadd.s32 4294967295, %s5049_s24   ;;  %s3744_s26 = sadd.s32 4294967294, %s5049_s24   ;;  %s5049_s24 = sphi %s5098_s24, %s6229_s24   ;;  %s5045_s23 = sphi %s5096_s23, %s6228_s23   ;;  %s5041_s22 = sphi %s5094_s22, %s6227_s22   ;;  %s5037_s21 = sphi %s5092_s21, %s6226_s21  }
   0x6   : > { %s5117_s27 = sadd.s32 1, %s5049_s24   ;;  %s131_s28 = sadd.s32 1, %s5045_s23 }
   0x7   : > { %s128_s29 = ssub.s32 %s5049_s24, %s5117_s27  ;;  %p141_p0 = scmp.ne.s32.totalorder %s5045_s23, %s5041_s22 }
   0x8   : > { %p129_p1 = scmp.eq.s32.totalorder %s128_s29, 0  ;;  %p142_p2 = scmp.eq.s32.totalorder %s5113_s25, 2 }
   0x9   : > { %p147_p3 = scmp.ne.s32.totalorder %s5041_s22, %s5037_s21  ;;  %p148_p4 = scmp.eq.s32.totalorder %s3744_s26, 2 }
   0xa   : > { %s5130_s30 = scalar_select %p129_p1, %s5045_s23, %s131_s28  }
   0xb   : > { %p5132_p5 = por %p142_p2, %p141_p0  ;;  %p5136_p6 = por %p148_p4, %p147_p3 }
   0xc   : > { %p3747_p7 = scmp.ge.s32.totalorder %s5049_s24, 1  ;;  %p250_p8 = scmp.lt.s32.totalorder %s5049_s24, 4 }
   0xe   : > { %p251_p9 = pnand %p3747_p7, %p250_p8 }
  0x10   : > { %254 = sbr.rel (%p251_p9) target bundleno = 606 (0x25e), region = 36 }
  0x17   : > { %v4893_v0 = vld [vmem:[%s6193_s2 + $0x8] sm:$0xff]   ;;  %s5146_s11 = sshll.u32 %s5113_s25, 5  ;;  %v5151_v1 = vld [vmem:[%s6193_s2 + $0x20] sm:$0xff]   ;;  %vm534_vm0 = vsmask.f32 7424  ;;  %vm673_vm2 = vcmask 130048  }
  0x18   : > { %p302_p10 = scmp.lt.s32.totalorder %s5146_s11, 127  ;;  %4275 = vmatprep.subr.bf16.mxu1 %v4893_v0  ;;  %v4897_v2 = vld [vmem:[%s6193_s2] sm:$0xff]   ;;  %4411 = vmatprep.subr.bf16.mxu0 %v5151_v1  ;;  %v5162_v3 = vld [vmem:[%s6193_s2 + $0x28] sm:$0xff]   ;;  %vm1618_vm1 = vsmask.f32 6400  ;;  %v5223_v37 = vld [vmem:[%s6193_s2 + $0x10] sm:$0xff]  }
  0x19   : > { %4276 = vmatpush3.bf16.msra.mxu1 %v4893_v0  ;;  %4412 = vmatpush3.bf16.msra.mxu0 %v5151_v1  ;;  %v5235_v42 = vld [vmem:[%s6193_s2 + $0x30] sm:$0xff]   ;;  %s3990_s14 = sadd.s32 32, %s5146_s11  ;;  %vm1946_vm3 = vcmask 1045504   ;;  %vm2446_vm4 = vsmask.f32 5376  ;;  %vm1118_vm5 = vcmask 1046528  }
  0x1a   : > { %s303_s16 = scalar_select %p302_p10, %s5146_s11, 127  ;;  %4309 = vmatprep.subr.bf16.mxu1 %v4897_v2  ;;  %4445 = vmatprep.subr.bf16.mxu0 %v5162_v3  ;;  %vm2774_vm6 = vcmask 1044480  }
  0x1b   : > { %p5264_p11 = scmp.lt.s32.totalorder %s3990_s14, 127  ;;  %p316_p12 = scmp.lt.s32.totalorder %s5146_s11, 95 }
  0x1c   : > { %s3752_s19 = sshll.u32 %s303_s16, 2  ;;  %s4026_s28 = sshll.u32 %s5113_s25, 11 }
  0x1d   : > { %s5169_s29 = scalar_lea.vmem %s6191_s0, %s3752_s19  ;;  %s6231_s14 = smov (!%p5264_p11, %s3990_s14), 127 }
  0x1e   : > { %v5172_v4 = vld [vmem:[%s5169_s29] sm:$0xff]   ;;  %v5175_v5 = vld [vmem:[%s5169_s29 + $0x8] sm:$0xff]   ;;  %v5178_v6 = vld [vmem:[%s5169_s29 + $0x10] sm:$0xff]   ;;  %s3754_s16 = sshll.u32 %s6231_s14, 2  ;;  %s6233_s11 = smov (!%p316_p12, %s5146_s11), 95 }
  0x1f   : > { %v536_v7 = vshrl.u32 %v5172_v4, 16  ;;  %v538_v8 = vshll.u32 %v5172_v4, 16  ;;  %v543_v9 = vshll.u32 %v5175_v5, 16  ;;  %v547_v10 = vshrl.u32 %v5175_v5, 16  ;;  %v5191_v13 = vld [vmem:[%s5169_s29 + $0x18] sm:$0xff]   ;;  %v5194_v14 = vld [vmem:[%s5169_s29 + $0x20] sm:$0xff]   ;;  %s5327_s19 = scalar_lea.vmem %s6192_s1, %s3754_s16  ;;  %s6073_s13 = scalar_lea.hbm %s6195_s4, %s4026_s28 }
  0x20   : > { %v5185_v11 = vshll.u32 %v5178_v6, 16  ;;  %v5188_v12 = vshrl.u32 %v5178_v6, 16  ;;  %v5200_v22 = vshll.u32 %v5191_v13, 16  ;;  %v5203_v26 = vshrl.u32 %v5191_v13, 16  ;;  %v5206_v27 = vld [vmem:[%s5169_s29 + $0x28] sm:$0xff]   ;;  %v5218_v36 = vld [vmem:[%s5169_s29 + $0x30] sm:$0xff]  }
  0x21   : > { %v540_v15 = vrot.slane %v538_v8, 1  ;;  %v545_v16 = vrot.slane %v543_v9, 1  ;;  %v1619_v17 = vrot.slane %v547_v10, 1  ;;  %v1620_v18 = vrot.slane %v543_v9, 2  ;;  %v5246_v47 = vld [vmem:[%s5169_s29 + $0x38] sm:$0xff]   ;;  %v5274_v59 = vld [vmem:[%s5169_s29 + $0x40] sm:$0xff]  }
  0x22   : > { %v1622_v19 = vrot.slane %v5188_v12, 1  ;;  %v1623_v20 = vrot.slane %v5185_v11, 2  ;;  %v553_v21 = vrot.slane %v5185_v11, 1  ;;  %v1627_v29 = vrot.slane %v5200_v22, 2  ;;  %s3756_s14 = sshll.u32 %s6233_s11, 3  ;;  %s5052_s16 = smov [#allocation2]  }
  0x23   : > { %v541_v23 = vor.u32 %v540_v15, %v536_v7  ;;  %v549_v24 = vor.u32 %v547_v10, %v545_v16  ;;  %v1621_v25 = vor.u32 %v1620_v18, %v1619_v17  ;;  %v561_v31 = vrot.slane %v5200_v22, 1  ;;  %v5305_v18 = vld [vmem:[%s5169_s29 + $0x48] sm:$0xff]   ;;  %s5662_s17 = scalar_lea.vmem %s6194_s3, %s3756_s14 }
  0x24   : > { %v1624_v28 = vor.u32 %v1623_v20, %v1622_v19  ;;  %v557_v30 = vor.u32 %v5188_v12, %v553_v21  ;;  %v1626_v34 = vrot.slane %v5203_v26, 1  ;;  %v5215_v35 = vshll.u32 %v5194_v14, 16 }
  0x25   : > { %v546_v32 = vsel %vm534_vm0, %v541_v23, %v545_v16  ;;  %v554_v33 = vsel %vm534_vm0, %v549_v24, %v553_v21  ;;  %v5229_v40 = vshrl.u32 %v5194_v14, 16  ;;  %v565_v41 = vor.u32 %v5203_v26, %v561_v31 }
  0x26   : > { %4277 = vmatprep.mubr.msk.bf16.mxu1 %vm673_vm2, %v546_v32  ;;  %v1625_v38 = vsel %vm1618_vm1, %v1621_v25, %v1624_v28  ;;  %v562_v39 = vsel %vm534_vm0, %v557_v30, %v561_v31  ;;  %v1628_v43 = vor.u32 %v1627_v29, %v1626_v34  ;;  %v1631_v44 = vrot.slane %v5215_v35, 2 }
  0x27   : > { %4413 = vmatprep.mubr.msk.bf16.mxu0 %vm673_vm2, %v1625_v38  ;;  %4278 = vmatmul.mubr.msk.bf16.vlgmr.msra.gmra.mrb[0].mxu1 %vm673_vm2, %v554_v33  ;;  %v569_v45 = vrot.slane %v5215_v35, 1  ;;  %v5243_v46 = vshll.u32 %v5206_v27, 16  ;;  %v1630_v48 = vrot.slane %v5229_v40, 1  ;;  %v5251_v49 = vshrl.u32 %v5206_v27, 16  ;;  %v5331_v38 = vld [vmem:[%s5169_s29 + $0x50] sm:$0xff]  }
  0x28   : > { %4310 = vmatpush3.bf16.msra.mxu1 %v4897_v2  ;;  %4281 = vmatprep.mubr.msk.bf16.mxu1 %vm673_vm2, %v562_v39  ;;  %v5254_v50 = vshll.u32 %v5218_v36, 16  ;;  %v5257_v51 = vshrl.u32 %v5218_v36, 16  ;;  %v1629_v52 = vsel %vm1618_vm1, %v1624_v28, %v1628_v43  ;;  %v5279_v61 = vshll.u32 %v5246_v47, 16 }
  0x29   : > { %v1635_v53 = vrot.slane %v5243_v46, 2  ;;  %v573_v54 = vor.u32 %v5229_v40, %v569_v45  ;;  %4343 = vmatprep.subr.bf16.mxu1 %v5223_v37  ;;  %4414 = vmatmul.mubr.msk.bf16.vlgmr.msra.gmra.mrb[0].mxu0 %vm673_vm2, %v1629_v52  ;;  %v1632_v55 = vor.u32 %v1631_v44, %v1630_v48  ;;  %v1634_v56 = vrot.slane %v5251_v49, 1 }
  0x2a   : > { %v577_v57 = vrot.slane %v5243_v46, 1  ;;  %v1638_v58 = vrot.slane %v5257_v51, 1  ;;  %4446 = vmatpush3.bf16.msra.mxu0 %v5162_v3  ;;  %v1639_v60 = vrot.slane %v5254_v50, 2  ;;  %v5282_v62 = vshrl.u32 %v5246_v47, 16 }
  0x2b   : > { %v1633_v63 = vsel %vm1618_vm1, %v1628_v43, %v1632_v55  ;;  %v570_v0 = vsel %vm534_vm0, %v565_v41, %v569_v45  ;;  %v1636_v2 = vor.u32 %v1635_v53, %v1634_v56  ;;  %4479 = vmatprep.subr.bf16.mxu0 %v5235_v42  ;;  %v585_v8 = vrot.slane %v5254_v50, 1  ;;  %v5343_v53 = vld [vmem:[%s5169_s29 + $0x58] sm:$0xff]  }
  0x2c   : > { %4417 = vmatprep.mubr.msk.bf16.mxu0 %vm673_vm2, %v1633_v63  ;;  %v578_v3 = vsel %vm534_vm0, %v573_v54, %v577_v57  ;;  %v1640_v7 = vor.u32 %v1639_v60, %v1638_v58  ;;  %v5295_v9 = vshll.u32 %v5274_v59, 16  ;;  %v1642_v15 = vrot.slane %v5282_v62, 1 }
  0x2d   : > { %v1637_v10 = vsel %vm1618_vm1, %v1632_v55, %v1636_v2  ;;  %v1643_v16 = vrot.slane %v5279_v61, 2  ;;  %v5302_v17 = vshrl.u32 %v5274_v59, 16  ;;  %v581_v20 = vor.u32 %v5251_v49, %v577_v57 }
  0x2e   : > { %v1641_v19 = vsel %vm1618_vm1, %v1636_v2, %v1640_v7  ;;  %v1647_v21 = vrot.slane %v5295_v9, 2  ;;  %v589_v23 = vor.u32 %v5257_v51, %v585_v8  ;;  %v593_v24 = vrot.slane %v5279_v61, 1  ;;  %v5363_v2 = vld [vmem:[%s5169_s29 + $0x60] sm:$0xff]  }
  0x2f   : > { %4282 = vmatmul.mubr.msk.bf16.gmra.mrb[4].mxu1 %vm673_vm2, %v570_v0  ;;  %v1646_v25 = vrot.slane %v5302_v17, 1  ;;  %v1644_v28 = vor.u32 %v1643_v16, %v1642_v15  ;;  %v5317_v29 = vshll.u32 %v5305_v18, 16  ;;  %v5320_v30 = vshrl.u32 %v5305_v18, 16  ;;  %v5373_v15 = vld [vmem:[%s5169_s29 + $0x68] sm:$0xff]  }
  0x30   : > { %4285 = vmatprep.mubr.msk.bf16.mxu1 %vm673_vm2, %v578_v3  ;;  %v586_v31 = vsel %vm534_vm0, %v581_v20, %v585_v8  ;;  %v594_v33 = vsel %vm534_vm0, %v589_v23, %v593_v24  ;;  %v601_v34 = vrot.slane %v5295_v9, 1  ;;  %v597_v45 = vor.u32 %v5282_v62, %v593_v24  ;;  %v356_v24 = vld [vmem:[%s5327_s19 + $0x4] sm:$0xf] }
  0x31   : > { %4418 = vmatmul.mubr.msk.bf16.gmra.mrb[4].mxu0 %vm673_vm2, %v1637_v10  ;;  %v1648_v32 = vor.u32 %v1647_v21, %v1646_v25  ;;  %v1645_v39 = vsel %vm1618_vm1, %v1640_v7, %v1644_v28  ;;  %v1650_v41 = vrot.slane %v5320_v30, 1  ;;  %v1651_v43 = vrot.slane %v5317_v29, 2 }
  0x32   : > { %4421 = vmatprep.mubr.msk.bf16.mxu0 %vm673_vm2, %v1641_v19  ;;  %v605_v48 = vor.u32 %v5302_v17, %v601_v34  ;;  %v609_v52 = vrot.slane %v5317_v29, 1  ;;  %v5350_v55 = vshll.u32 %v5331_v38, 16  ;;  %v602_v56 = vsel %vm534_vm0, %v597_v45, %v601_v34  ;;  %v355_v34 = vld [vmem:[%s5327_s19] sm:$0xf] }
  0x33   : > { %v1649_v44 = vsel %vm1618_vm1, %v1644_v28, %v1648_v32  ;;  %v5347_v54 = vor.u32 %v1651_v43, %v1650_v41  ;;  %v1947_v57 = vrot.slane %v5175_v5, 2  ;;  %v1948_v58 = vrot.slane %v5178_v6, 2 }
  0x34   : > { %v610_v60 = vsel %vm534_vm0, %v605_v48, %v609_v52  ;;  %v5357_v63 = vshrl.u32 %v5331_v38, 16  ;;  %v5360_v0 = vshll.u32 %v5343_v53, 16  ;;  %v617_v7 = vrot.slane %v5350_v55, 1  ;;  %v358_v48 = vld [vmem:[%s5327_s19 + $0xc] sm:$0xf] }
  0x35   : > { %6213 = vst [vmem:[#allocation9_spill] sm:$0xff] %v5347_v54  ;;  %v1653_v3 = vsel %vm1618_vm1, %v1648_v32, %v5347_v54  ;;  %v1949_v8 = vsel %vm1946_vm3, %v1947_v57, %v1948_v58  ;;  %v613_v10 = vor.u32 %v5320_v30, %v609_v52  ;;  %v5379_v20 = vshrl.u32 %v5343_v53, 16 }
  0x36   : > { %6214 = vst [vmem:[#allocation10_spill] sm:$0xff] %v5360_v0  ;;  %v621_v16 = vor.u32 %v5357_v63, %v617_v7  ;;  %v625_v19 = vrot.slane %v5360_v0, 1  ;;  %v5382_v21 = vshll.u32 %v5363_v2, 16  ;;  %v1950_v23 = vrot.slane %v5191_v13, 2 }
  0x37   : > { %4286 = vmatmul.mubr.msk.bf16.gmra.mrb[8].mxu1 %vm673_vm2, %v586_v31  ;;  %v618_v25 = vsel %vm534_vm0, %v613_v10, %v617_v7  ;;  %v1952_v28 = vrot.slane %v5194_v14, 2  ;;  %v5390_v31 = vshrl.u32 %v5363_v2, 16  ;;  %v5393_v32 = vshll.u32 %v5373_v15, 16  ;;  %v5420_v7 = vld [vmem:[%s5327_s19 + $0x8] sm:$0xf] }
  0x38   : > { %4289 = vmatprep.mubr.msk.bf16.mxu1 %vm673_vm2, %v594_v33  ;;  %6215 = vst [vmem:[#allocation11_spill] sm:$0xff] %v5382_v21  ;;  %v626_v33 = vsel %vm534_vm0, %v621_v16, %v625_v19  ;;  %v633_v41 = vrot.slane %v5382_v21, 1  ;;  %v1954_v43 = vrot.slane %v5206_v27, 2  ;;  %v5403_v45 = vcombine.low %v355_v34, %v356_v24 }
  0x39   : > { %4422 = vmatmul.mubr.msk.bf16.gmra.mrb[8].mxu0 %vm673_vm2, %v1645_v39  ;;  %6216 = vst [vmem:[#allocation12_spill] sm:$0xff] %v5390_v31  ;;  %6217 = vst [vmem:[#allocation13_spill] sm:$0xff] %v5393_v32  ;;  %v629_v39 = vor.u32 %v5379_v20, %v625_v19  ;;  %v5408_v52 = vsel %vm1946_vm3, %v1948_v58, %v1950_v23  ;;  %v1956_v58 = vrot.slane %v5218_v36, 2  ;;  %v5429_v10 = vshrl.u32 %v5373_v15, 16 }
  0x3a   : > { %4425 = vmatprep.mubr.msk.bf16.mxu0 %vm673_vm2, %v1649_v44  ;;  %v5401_v44 = vld [vmem:[%s5169_s29 + $0x70] sm:$0xff]   ;;  %6218 = vst [vmem:[#allocation14_spill] sm:$0xff] %v5403_v45  ;;  %v637_v57 = vor.u32 %v5390_v31, %v633_v41  ;;  %v5432_v16 = vcombine.low %v5420_v7, %v358_v48  ;;  %v2447_v48 = vrot.slane %v5188_v12, 2  ;;  %v2455_v31 = vrot.slane %v5215_v35, 3 }
  0x3b   : > { %v634_v19 = vsel %vm534_vm0, %v629_v39, %v633_v41  ;;  %v5441_v24 = vshll.u32 %v5401_v44, 16  ;;  %v2448_v39 = vrot.slane %v5185_v11, 3  ;;  %v5455_v54 = vshrl.u32 %v5401_v44, 16 }
  0x3c   : > { %v2458_v0 = vrot.slane %v5251_v49, 2  ;;  %v2463_v35 = vrot.slane %v5254_v50, 3  ;;  %v1960_v50 = vrot.slane %v5274_v59, 2 }
  0x3d   : > { %v2449_v11 = vor.u32 %v2448_v39, %v2447_v48  ;;  %v2462_v48 = vrot.slane %v5257_v51, 2  ;;  %v2466_v51 = vrot.slane %v5282_v62, 2 }
  0x3f   : > { %4290 = vmatmul.mubr.msk.bf16.gmra.mrb[12].mxu1 %vm673_vm2, %v602_v56  ;;  %v5412_v56 = vsel %vm1946_vm3, %v1950_v23, %v1952_v28  ;;  %v5438_v23 = vsel %vm1946_vm3, %v1952_v28, %v1954_v43  ;;  %v2450_v28 = vrot.slane %v5203_v26, 2  ;;  %v2454_v26 = vrot.slane %v5229_v40, 2 }
  0x40   : > { %4293 = vmatprep.mubr.msk.bf16.mxu1 %vm673_vm2, %v610_v60  ;;  %v641_v60 = vrot.slane %v5393_v32, 1  ;;  %v649_v32 = vrot.slane %v5441_v24, 1  ;;  %v5480_v40 = vcombine.low %v355_v34, %v355_v34  ;;  %v2464_v49 = vor.u32 %v2463_v35, %v2462_v48 }
  0x41   : > { %4426 = vmatmul.mubr.msk.bf16.gmra.mrb[12].mxu0 %vm673_vm2, %v1653_v3  ;;  %v5417_v3 = vld [vmem:[%s5169_s29 + $0x78] sm:$0xff]   ;;  %v2456_v39 = vor.u32 %v2455_v31, %v2454_v26  ;;  %v1958_v31 = vrot.slane %v5246_v47, 2  ;;  %v2470_v26 = vrot.slane %v5302_v17, 2  ;;  %v2471_v48 = vrot.slane %v5295_v9, 3 }
  0x42   : > { %4447 = vmatprep.mubr.msk.bf16.mxu0 %vm673_vm2, %v1949_v8  ;;  %v5425_v8 = vld [vmem:[%s6193_s2 + $0x38] sm:$0xff]   ;;  %v642_v41 = vsel %vm534_vm0, %v637_v57, %v641_v60  ;;  %v5470_v57 = vsel %vm1946_vm3, %v1954_v43, %v1956_v58  ;;  %v2474_v9 = vrot.slane %v5320_v30, 2 }
  0x47   : > { %4294 = vmatmul.mubr.msk.bf16.gmra.mrb[16].mxu1 %vm673_vm2, %v618_v25  ;;  %v5444_v25 = vrot.slane %v5403_v45, 2  ;;  %v5458_v45 = vshll.u32 %v5417_v3, 16 }
  0x48   : > { %4297 = vmatprep.mubr.msk.bf16.mxu1 %vm673_vm2, %v626_v33  ;;  %v6209_v33 = vrot.slane %v5432_v16, 2 }
  0x49   : > { %4448 = vmatmul.mubr.msk.bf16.vlgmr.msra.gmra.mrb[0].mxu0 %vm673_vm2, %v5408_v52 }
  0x4a   : > { %4480 = vmatpush3.bf16.msra.mxu0 %v5235_v42  ;;  %4451 = vmatprep.mubr.msk.bf16.mxu0 %vm673_vm2, %v5412_v56  ;;  %v2451_v42 = vrot.slane %v5200_v22, 3  ;;  %v5466_v12 = vsel %vm1946_vm3, %v5444_v25, %v6209_v33  ;;  %v645_v22 = vor.u32 %v5429_v10, %v641_v60  ;;  %v2459_v33 = vrot.slane %v5243_v46, 3 }
  0x4b   : > { %4513 = vmatprep.subr.bf16.mxu0 %v5425_v8  ;;  %v657_v60 = vrot.slane %v5458_v45, 1 }
  0x4c   : > { %v2452_v21 = vor.u32 %v2451_v42, %v2450_v28  ;;  %v2460_v28 = vor.u32 %v2459_v33, %v2458_v0  ;;  %v2467_v0 = vrot.slane %v5279_v61, 3  ;;  %v650_v33 = vsel %vm534_vm0, %v645_v22, %v649_v32 }
  0x4d   : > { %v5515_v61 = vsel %vm1946_vm3, %v1956_v58, %v1958_v31  ;;  %v2472_v22 = vor.u32 %v2471_v48, %v2470_v26  ;;  %v2475_v58 = vrot.slane %v5317_v29, 3  ;;  %v1972_v26 = vrot.slane %v5401_v44, 2 }
  0x4e   : > { %v5483_v43 = vsel %vm2446_vm4, %v2449_v11, %v2452_v21  ;;  %v5491_v46 = vsel %vm2446_vm4, %v2452_v21, %v2456_v39  ;;  %v5499_v34 = vsel %vm2446_vm4, %v2456_v39, %v2460_v28  ;;  %v5504_v21 = vshrl.u32 %v5417_v3, 16 }
  0x4f   : > { %4298 = vmatmul.mubr.msk.bf16.gmra.mrb[20].mxu1 %vm673_vm2, %v634_v19  ;;  %v653_v19 = vor.u32 %v5455_v54, %v649_v32  ;;  %v5508_v62 = vsel %vm2446_vm4, %v2460_v28, %v2464_v49  ;;  %v2468_v11 = vor.u32 %v2467_v0, %v2466_v51  ;;  %v5522_v39 = vsel %vm1946_vm3, %v1958_v31, %v1960_v50 }
  0x50   : > { %4301 = vmatprep.mubr.msk.bf16.mxu1 %vm673_vm2, %v642_v41  ;;  %v663_v41 = vshll.u32 %v5480_v40, 16  ;;  %v661_v35 = vor.u32 %v5504_v21, %v657_v60  ;;  %v1962_v28 = vrot.slane %v5305_v18, 2  ;;  %v5537_v51 = vor.u32 %v2475_v58, %v2474_v9 }
  0x51   : > { %4452 = vmatmul.mubr.msk.bf16.gmra.mrb[4].mxu0 %vm673_vm2, %v5438_v23  ;;  %v658_v42 = vsel %vm534_vm0, %v653_v19, %v657_v60  ;;  %v5518_v32 = vsel %vm2446_vm4, %v2464_v49, %v2468_v11  ;;  %v5526_v17 = vsel %vm2446_vm4, %v2468_v11, %v2472_v22  ;;  %v1964_v60 = vrot.slane %v5331_v38, 2 }
  0x52   : > { %4455 = vmatprep.mubr.msk.bf16.mxu0 %vm673_vm2, %v5470_v57  ;;  %v665_v19 = vrot.slane %v663_v41, 1  ;;  %v5541_v31 = vsel %vm2446_vm4, %v2472_v22, %v5537_v51  ;;  %v1963_v30 = vsel %vm1946_vm3, %v1960_v50, %v1962_v28  ;;  %v1966_v0 = vrot.slane %v5343_v53, 2  ;;  %v5558_v41 = vld [vmem:[%s6193_s2 + $0x18] sm:$0xff]  }
  0x53   : > { %v5548_v29 = vsel %vm1946_vm3, %v1962_v28, %v1964_v60  ;;  %v1970_v11 = vrot.slane %v5373_v15, 2  ;;  %v1974_v22 = vrot.slane %v5417_v3, 2  ;;  %v5626_v28 = vld [vmem:[%s6193_s2 + $0x40] sm:$0xff]  }
  0x54   : > { %v666_v49 = vsel %vm534_vm0, %v661_v35, %v665_v19  ;;  %v1967_v50 = vsel %vm1946_vm3, %v1964_v60, %v1966_v0  ;;  %v5597_v19 = vcombine.low %v5420_v7, %v5420_v7  ;;  %v3218_v60 = vld [vmem:[%s5662_s17 + $0x18] sm:$0xff] }
  0x55   : > { %v5583_v48 = vsel %vm1946_vm3, %v1970_v11, %v1972_v26  ;;  %v5593_v35 = vsel %vm1946_vm3, %v1972_v26, %v1974_v22  ;;  %v5603_v9 = vsel %vm1946_vm3, %v1974_v22, %v5444_v25  ;;  %v3224_v26 = vld [vmem:[%s5662_s17 + $0x48] sm:$0xff]  ;;  %v3225_v22 = vld [vmem:[%s5662_s17 + $0x50] sm:$0xff] }
  0x56   : > { %v1978_v58 = vrot.slane %v5597_v19, 2 }
  0x57   : > { %4302 = vmatmul.mubr.msk.bf16.gmra.mrb[24].mxu1 %vm673_vm2, %v650_v33  ;;  %v1968_v33 = vrot.slane %v5363_v2, 2 }
  0x58   : > { %4305 = vmatprep.mubr.msk.bf16.mxu1 %vm673_vm2, %v658_v42  ;;  %v1979_v7 = vsel %vm1946_vm3, %v5444_v25, %v1978_v58  ;;  %v3215_v25 = vld [vmem:[%s5662_s17] sm:$0xff]  ;;  %v1136_v58 = vrot.slane %v5305_v18, 1 }
  0x59   : > { %4456 = vmatmul.mubr.msk.bf16.gmra.mrb[8].mxu0 %vm673_vm2, %v5515_v61  ;;  %v5567_v42 = vsel %vm1946_vm3, %v1966_v0, %v1968_v33 }
  0x5a   : > { %4459 = vmatprep.mubr.msk.bf16.mxu0 %vm673_vm2, %v5522_v39 }
  0x5f   : > { %4306 = vmatmul.mubr.msk.bf16.gmra.mrb[28].mxu1 %vm673_vm2, %v666_v49  ;;  %v1128_v49 = vrot.slane %v5206_v27, 1 }
  0x60   : > { %4311 = vmatprep.mubr.msk.bf16.mxu1 %vm673_vm2, %v5172_v4 }
  0x61   : > { %4460 = vmatmul.mubr.msk.bf16.gmra.mrb[12].mxu0 %vm673_vm2, %v1963_v30 }
  0x62   : > { %4463 = vmatprep.mubr.msk.bf16.mxu0 %vm673_vm2, %v5548_v29 }
  0x67   : > { %4312 = vmatmul.mubr.msk.bf16.vlgmr.msra.gmra.mrb[0].mxu1 %vm673_vm2, %v5175_v5 }
  0x68   : > { %4344 = vmatpush3.bf16.msra.mxu1 %v5223_v37  ;;  %4315 = vmatprep.mubr.msk.bf16.mxu1 %vm673_vm2, %v5178_v6  ;;  %v5578_v37 = vsel %vm1946_vm3, %v1968_v33, %v1970_v11  ;;  %v1130_v33 = vrot.slane %v5218_v36, 1 }
  0x69   : > { %4377 = vmatprep.subr.bf16.mxu1 %v5558_v41  ;;  %4464 = vmatmul.mubr.msk.bf16.gmra.mrb[16].mxu0 %vm673_vm2, %v1967_v50 }
  0x6a   : > { %4467 = vmatprep.mubr.msk.bf16.mxu0 %vm673_vm2, %v5567_v42  ;;  %v5711_v11 = vsel %vm1118_vm5, %v1128_v49, %v1130_v33 }
  0x6f   : > { %4316 = vmatmul.mubr.msk.bf16.gmra.mrb[4].mxu1 %vm673_vm2, %v5191_v13 }
  0x70   : > { %4319 = vmatprep.mubr.msk.bf16.mxu1 %vm673_vm2, %v5194_v14 }
  0x71   : > { %4468 = vmatmul.mubr.msk.bf16.gmra.mrb[20].mxu0 %vm673_vm2, %v5578_v37 }
  0x72   : > { %4471 = vmatprep.mubr.msk.bf16.mxu0 %vm673_vm2, %v5583_v48 }
  0x77   : > { %4320 = vmatmul.mubr.msk.bf16.gmra.mrb[8].mxu1 %vm673_vm2, %v5206_v27 }
  0x78   : > { %4323 = vmatprep.mubr.msk.bf16.mxu1 %vm673_vm2, %v5218_v36 }
  0x79   : > { %4472 = vmatmul.mubr.msk.bf16.gmra.mrb[24].mxu0 %vm673_vm2, %v5593_v35 }
  0x7a   : > { %4475 = vmatprep.mubr.msk.bf16.mxu0 %vm673_vm2, %v5603_v9 }
  0x7f   : > { %4324 = vmatmul.mubr.msk.bf16.gmra.mrb[12].mxu1 %vm673_vm2, %v5246_v47 }
  0x80   : > { %4327 = vmatprep.mubr.msk.bf16.mxu1 %vm673_vm2, %v5274_v59 }
  0x81   : > { %4476 = vmatmul.mubr.msk.bf16.gmra.mrb[28].mxu0 %vm673_vm2, %v1979_v7  ;;  %v3226_v7 = vld [vmem:[%s5662_s17 + $0x58] sm:$0xff] }
  0x82   : > { %4481 = vmatprep.mubr.msk.bf16.mxu0 %vm673_vm2, %v5408_v52  ;;  %v1119_v52 = vrot.slane %v5172_v4, 1  ;;  %v1122_v4 = vrot.slane %v5178_v6, 1 }
  0x87   : > { %4328 = vmatmul.mubr.msk.bf16.gmra.mrb[16].mxu1 %vm673_vm2, %v5305_v18 }
  0x88   : > { %4331 = vmatprep.mubr.msk.bf16.mxu1 %vm673_vm2, %v5331_v38 }
  0x89   : > { %4482 = vmatmul.mubr.msk.bf16.vlgmr.msra.gmra.mrb[0].mxu0 %vm673_vm2, %v5412_v56  ;;  %v1120_v56 = vrot.slane %v5175_v5, 1  ;;  %v1124_v5 = vrot.slane %v5191_v13, 1  ;;  %v3216_v13 = vld [vmem:[%s5662_s17 + $0x8] sm:$0xff] }
  0x8a   : > { %4514 = vmatpush3.bf16.msra.mxu0 %v5425_v8  ;;  %4485 = vmatprep.mubr.msk.bf16.mxu0 %vm673_vm2, %v5438_v23  ;;  %v5051_v8 = vmov 0  }
  0x8b   : > { %4547 = vmatprep.subr.bf16.mxu0 %v5626_v28  ;;  %4891 = vset.pattern.permute.xlu0 %v5051_v8  ;;  %v1121_v23 = vsel %vm1118_vm5, %v1119_v52, %v1120_v56  ;;  %v5670_v6 = vsel %vm1118_vm5, %v1120_v56, %v1122_v4  ;;  %v3227_v52 = vld [vmem:[%s5662_s17 + $0x60] sm:$0xff] }
  0x8c   : > { %4892 = vset.pattern.permute.xlu1 %v5051_v8  ;;  %3249 = vperm.xlu0 %4891, %v3215_v25   ;;  %v1138_v25 = vrot.slane %v5331_v38, 1 }
  0x8f   : > { %4332 = vmatmul.mubr.msk.bf16.gmra.mrb[20].mxu1 %vm673_vm2, %v5343_v53 }
  0x90   : > { %4335 = vmatprep.mubr.msk.bf16.mxu1 %vm673_vm2, %v5363_v2  ;;  %3254 = vperm.xlu0 %4891, %v3216_v13   ;;  %v3230_v13 = vld [vmem:[%s5662_s17 + $0x78] sm:$0xff] }
  0x91   : > { %4486 = vmatmul.mubr.msk.bf16.gmra.mrb[4].mxu0 %vm673_vm2, %v5470_v57  ;;  %v3217_v57 = vld [vmem:[%s5662_s17 + $0x10] sm:$0xff] }
  0x92   : > { %4489 = vmatprep.mubr.msk.bf16.mxu0 %vm673_vm2, %v5515_v61  ;;  %3259 = vperm.xlu1 %4892, %v3217_v57   ;;  %v5674_v61 = vsel %vm1118_vm5, %v1122_v4, %v1124_v5  ;;  %v1140_v57 = vrot.slane %v5343_v53, 1 }
  0x96   : > { %3264 = vperm.xlu1 %4892, %v3218_v60   ;;  %v3232_v60 = vld [vmem:[%s5662_s17 + $0x88] sm:$0xff] }
  0x97   : > { %4336 = vmatmul.mubr.msk.bf16.gmra.mrb[24].mxu1 %vm673_vm2, %v5373_v15 }
  0x98   : > { %4339 = vmatprep.mubr.msk.bf16.mxu1 %vm673_vm2, %v5401_v44 }
  0x99   : > { %4490 = vmatmul.mubr.msk.bf16.gmra.mrb[8].mxu0 %vm673_vm2, %v5522_v39  ;;  %v1126_v39 = vrot.slane %v5194_v14, 1  ;;  %v3220_v14 = vld [vmem:[%s5662_s17 + $0x28] sm:$0xff] }
  0x9a   : > { %4493 = vmatprep.mubr.msk.bf16.mxu0 %vm673_vm2, %v1963_v30  ;;  %v3219_v30 = vld [vmem:[%s5662_s17 + $0x20] sm:$0xff]  ;;  %3274 = vperm.xlu1 %4892, %v3220_v14   ;;  %v3233_v14 = vld [vmem:[%s5662_s17 + $0x90] sm:$0xff] }
  0x9b   : > { %3269 = vperm.xlu0 %4891, %v3219_v30   ;;  %v5695_v0 = vsel %vm1118_vm5, %v1126_v39, %v1128_v49  ;;  %v5757_v49 = vsel %vm1118_vm5, %v1136_v58, %v1138_v25  ;;  %v5761_v30 = vsel %vm1118_vm5, %v1138_v25, %v1140_v57  ;;  %v3242_v25 = vld [vmem:[%s5662_s17 + $0xd8] sm:$0xff] }
  0x9f   : > { %4340 = vmatmul.mubr.msk.bf16.gmra.mrb[28].mxu1 %vm673_vm2, %v5417_v3 }
  0xa0   : > { %4345 = vmatprep.mubr.msk.bf16.mxu1 %vm673_vm2, %v1121_v23  ;;  %v3228_v23 = vld [vmem:[%s5662_s17 + $0x68] sm:$0xff] }
  0xa1   : > { %4494 = vmatmul.mubr.msk.bf16.gmra.mrb[12].mxu0 %vm673_vm2, %v5548_v29  ;;  %v5691_v29 = vsel %vm1118_vm5, %v1124_v5, %v1126_v39  ;;  %v3231_v39 = vld [vmem:[%s5662_s17 + $0x80] sm:$0xff] }
  0xa2   : > { %4497 = vmatprep.mubr.msk.bf16.mxu0 %vm673_vm2, %v1967_v50  ;;  %v3222_v50 = vld [vmem:[%s5662_s17 + $0x38] sm:$0xff] }
  0xa3   : > { %3284 = vperm.xlu1 %4892, %v3222_v50  }
  0xa7   : > { %4346 = vmatmul.mubr.msk.bf16.vlgmr.msra.gmra.mrb[0].mxu1 %vm673_vm2, %v5670_v6  ;;  %3294 = vperm.xlu1 %4892, %v3224_v26   ;;  %v3236_v26 = vld [vmem:[%s5662_s17 + $0xa8] sm:$0xff] }
  0xa8   : > { %4378 = vmatpush3.bf16.msra.mxu1 %v5558_v41  ;;  %4349 = vmatprep.mubr.msk.bf16.mxu1 %vm673_vm2, %v5674_v61  ;;  %v1132_v41 = vrot.slane %v5246_v47, 1 }
  0xa9   : > { %4581 = vmatprep.subr.bf16.mxu1 %v5151_v1  ;;  %4498 = vmatmul.mubr.msk.bf16.gmra.mrb[16].mxu0 %vm673_vm2, %v5567_v42  ;;  %v3221_v1 = vld [vmem:[%s5662_s17 + $0x30] sm:$0xff]  ;;  %v3223_v42 = vld [vmem:[%s5662_s17 + $0x40] sm:$0xff] }
  0xaa   : > { %4501 = vmatprep.mubr.msk.bf16.mxu0 %vm673_vm2, %v5578_v37  ;;  %3279 = vperm.xlu0 %4891, %v3221_v1   ;;  %v5715_v37 = vsel %vm1118_vm5, %v1130_v33, %v1132_v41  ;;  %v1144_v1 = vrot.slane %v5373_v15, 1  ;;  %v3234_v33 = vld [vmem:[%s5662_s17 + $0x98] sm:$0xff] }
  0xab   : > { %3304 = vperm.xlu1 %4892, %v3226_v7  }
  0xae   : > { %3289 = vperm.xlu0 %4891, %v3223_v42  }
  0xaf   : > { %4350 = vmatmul.mubr.msk.bf16.gmra.mrb[4].mxu1 %vm673_vm2, %v5691_v29  ;;  %3314 = vperm.xlu1 %4892, %v3228_v23   ;;  %v1150_v23 = vrot.slane %v5480_v40, 1 }
  0xb0   : > { %4353 = vmatprep.mubr.msk.bf16.mxu1 %vm673_vm2, %v5695_v0 }
  0xb1   : > { %4502 = vmatmul.mubr.msk.bf16.gmra.mrb[20].mxu0 %vm673_vm2, %v5583_v48  ;;  %v5721_v48 = vld [vmem:[%s5327_s19 + $0x10] ss:$0 sps:$4 sm:$0xff]  }
  0xb2   : > { %4505 = vmatprep.mubr.msk.bf16.mxu0 %vm673_vm2, %v5593_v35  ;;  %v1134_v35 = vrot.slane %v5274_v59, 1  ;;  %3299 = vperm.xlu0 %4891, %v3225_v22   ;;  %v2236_v56 = vrot.slane %v5721_v48, 2  ;;  %v3237_v22 = vld [vmem:[%s5662_s17 + $0xb0] sm:$0xff] }
  0xb3   : > { %3324 = vperm.xlu1 %4892, %v3230_v13  }
  0xb4   : > { %v5735_v8 = vsel %vm1118_vm5, %v1132_v41, %v1134_v35  ;;  %v5739_v4 = vsel %vm1118_vm5, %v1134_v35, %v1136_v58  ;;  %v3235_v41 = vld [vmem:[%s5662_s17 + $0xa0] sm:$0xff] }
  0xb5   : > { %v3239_v35 = vld [vmem:[%s5662_s17 + $0xc0] sm:$0xff] }
  0xb6   : > { %3309 = vperm.xlu0 %4891, %v3227_v52   ;;  %v3240_v52 = vld [vmem:[%s5662_s17 + $0xc8] sm:$0xff] }
  0xb7   : > { %4354 = vmatmul.mubr.msk.bf16.gmra.mrb[8].mxu1 %vm673_vm2, %v5711_v11  ;;  %3334 = vperm.xlu1 %4892, %v3232_v60   ;;  %v3244_v60 = vld [vmem:[%s5662_s17 + $0xe8] sm:$0xff] }
  0xb8   : > { %4357 = vmatprep.mubr.msk.bf16.mxu1 %vm673_vm2, %v5715_v37 }
  0xb9   : > { %4506 = vmatmul.mubr.msk.bf16.gmra.mrb[24].mxu0 %vm673_vm2, %v5603_v9  ;;  %v3229_v9 = vld [vmem:[%s5662_s17 + $0x70] sm:$0xff] }
  0xba   : > { %4509 = vmatprep.mubr.msk.bf16.mxu0 %vm673_vm2, %v5466_v12  ;;  %v6219_v12 = vrot.slane %v5432_v16, 2  ;;  %3319 = vperm.xlu0 %4891, %v3229_v9   ;;  %v2482_v9 = vrot.slane %v5379_v20, 2 }
  0xbb   : > { %3344 = vperm.xlu1 %4892, %v3234_v33   ;;  %v6222_v33 = vld [vmem:[#allocation11_spill] sm:$0xff] }
  0xbc   : > { %v2237_v5 = vsel %vm1946_vm3, %v6219_v12, %v2236_v56  ;;  %v3241_v56 = vld [vmem:[%s5662_s17 + $0xd0] sm:$0xff]  ;;  %v6220_v12 = vld [vmem:[#allocation10_spill] sm:$0xff] }
  0xbe   : > { %3329 = vperm.xlu0 %4891, %v3231_v39  }
  0xbf   : > { %4358 = vmatmul.mubr.msk.bf16.gmra.mrb[12].mxu1 %vm673_vm2, %v5735_v8  ;;  %3354 = vperm.xlu1 %4892, %v3236_v26   ;;  %v2490_v26 = vrot.slane %v5429_v10, 2 }
  0xc0   : > { %4361 = vmatprep.mubr.msk.bf16.mxu1 %vm673_vm2, %v5739_v4 }
  0xc1   : > { %4510 = vmatmul.mubr.msk.bf16.gmra.mrb[28].mxu0 %vm673_vm2, %v2237_v5  ;;  %v2483_v5 = vrot.slane %v6220_v12, 3 }
  0xc2   : > { %4515 = vmatprep.mubr.msk.bf16.mxu0 %vm673_vm2, %v5483_v43  ;;  %v1142_v43 = vrot.slane %v5363_v2, 1  ;;  %3339 = vperm.xlu0 %4891, %v3233_v14   ;;  %v3245_v14 = vld [vmem:[%s5662_s17 + $0xf0] sm:$0xff] }
  0xc3   : > { %v2484_v40 = vor.u32 %v2483_v5, %v2482_v9  ;;  %v6224_v5 = vld [vmem:[#allocation14_spill] sm:$0xff] }
  0xc4   : > { %v5778_v50 = vsel %vm1118_vm5, %v1140_v57, %v1142_v43  ;;  %v5781_v42 = vsel %vm1118_vm5, %v1142_v43, %v1144_v1  ;;  %v3243_v57 = vld [vmem:[%s5662_s17 + $0xe0] sm:$0xff] }
  0xc6   : > { %3349 = vperm.xlu0 %4891, %v3235_v41   ;;  %v2487_v41 = vrot.slane %v6222_v33, 3 }
  0xc7   : > { %4362 = vmatmul.mubr.msk.bf16.gmra.mrb[16].mxu1 %vm673_vm2, %v5757_v49 }
  0xc8   : > { %4365 = vmatprep.mubr.msk.bf16.mxu1 %vm673_vm2, %v5761_v30 }
  0xc9   : > { %4516 = vmatmul.mubr.msk.bf16.vlgmr.msra.gmra.mrb[0].mxu0 %vm673_vm2, %v5491_v46  ;;  %v1146_v46 = vrot.slane %v5401_v44, 1 }
  0xca   : > { %4548 = vmatpush3.bf16.msra.mxu0 %v5626_v28  ;;  %4519 = vmatprep.mubr.msk.bf16.mxu0 %vm673_vm2, %v5499_v34  ;;  %v5791_v34 = vrot.slane %v5417_v3, 1  ;;  %v3238_v28 = vld [vmem:[%s5662_s17 + $0xb8] sm:$0xff] }
  0xcb   : > { %3359 = vperm.xlu0 %4891, %v3237_v22   ;;  %v5800_v58 = vsel %vm1118_vm5, %v1144_v1, %v1146_v46  ;;  %3364 = vperm.xlu1 %4892, %v3238_v28   ;;  %v6223_v22 = vld [vmem:[#allocation13_spill] sm:$0xff]  ;;  %v3246_v28 = vld [vmem:[%s5662_s17 + $0xf8] sm:$0xff]  ;;  %s4931_s17 = sshll.u32 %s5052_s16, 4  ;;  %s4932_s17 = int_to_ptr.vmem [resolvable:$false] %s4931_s17 }
  0xcc   : > { %v5804_v7 = vsel %vm1118_vm5, %v1146_v46, %v5791_v34  ;;  %v1151_v39 = vsel %vm1118_vm5, %v5791_v34, %v1150_v23  ;;  %v2491_v46 = vrot.slane %v6223_v22, 3  ;;  %v2498_v23 = vrot.slane %v5504_v21, 2  ;;  %s4933_s11 = scalar_lea.vmem %s4932_s17, 4096 }
  0xcf   : > { %4366 = vmatmul.mubr.msk.bf16.gmra.mrb[20].mxu1 %vm673_vm2, %v5778_v50  ;;  %3369 = vperm.xlu0 %4891, %v3239_v35   ;;  %v2492_v35 = vor.u32 %v2491_v46, %v2490_v26  ;;  %v2519_v26 = vshll.u32 %v5721_v48, 16 }
  0xd0   : > { %4369 = vmatprep.mubr.msk.bf16.mxu1 %vm673_vm2, %v5781_v42  ;;  %3374 = vperm.xlu1 %4892, %v3240_v52   ;;  %v2494_v52 = vrot.slane %v5455_v54, 2 }
  0xd1   : > { %4520 = vmatmul.mubr.msk.bf16.gmra.mrb[4].mxu0 %vm673_vm2, %v5508_v62  ;;  %v2478_v62 = vrot.slane %v5357_v63, 2 }
  0xd2   : > { %4523 = vmatprep.mubr.msk.bf16.mxu0 %vm673_vm2, %v5518_v32  ;;  %v2479_v32 = vrot.slane %v5350_v55, 3 }
  0xd3   : > { %3379 = vperm.xlu0 %4891, %v3241_v56   ;;  %v2495_v56 = vrot.slane %v5441_v24, 3 }
  0xd4   : > { %v2480_v13 = vor.u32 %v2479_v32, %v2478_v62  ;;  %3384 = vperm.xlu1 %4892, %v3242_v25   ;;  %v4923_v62 = vld [vmem:[%s6193_s2 + $0x20] sm:$0xff]   ;;  %v1679_v25 = vshrl.u32 %v6224_v5, 16 }
  0xd5   : > { %v2496_v9 = vor.u32 %v2495_v56, %v2494_v52  ;;  %v4924_v52 = vld [vmem:[%s5169_s29 + $0x10] sm:$0xff]  }
  0xd6   : > { %v2481_v43 = vsel %vm2446_vm4, %v5537_v51, %v2480_v13  ;;  %v2775_v56 = vrot.slane %v4924_v52, 3  ;;  %v1675_v52 = vrot.slane %v5458_v45, 2 }
  0xd7   : > { %4370 = vmatmul.mubr.msk.bf16.gmra.mrb[24].mxu1 %vm673_vm2, %v5800_v58  ;;  %3389 = vperm.xlu0 %4891, %v3243_v57   ;;  %v1682_v57 = vshll.u32 %v6224_v5, 16 }
  0xd8   : > { %4373 = vmatprep.mubr.msk.bf16.mxu1 %vm673_vm2, %v5804_v7  ;;  %3394 = vperm.xlu1 %4892, %v3244_v60   ;;  %v2502_v60 = vrot.slane %v1679_v25, 2 }
  0xd9   : > { %4524 = vmatmul.mubr.msk.bf16.gmra.mrb[8].mxu0 %vm673_vm2, %v5526_v17  ;;  %v6221_v17 = vld [vmem:[#allocation12_spill] sm:$0xff] }
  0xda   : > { %4527 = vmatprep.mubr.msk.bf16.mxu0 %vm673_vm2, %v5541_v31  ;;  %v2486_v1 = vrot.slane %v6221_v17, 2  ;;  %v2485_v31 = vsel %vm2446_vm4, %v2480_v13, %v2484_v40 }
  0xdb   : > { %3399 = vperm.xlu0 %4891, %v3245_v14   ;;  %v2503_v14 = vrot.slane %v1682_v57, 3 }
  0xdc   : > { %v2488_v51 = vor.u32 %v2487_v41, %v2486_v1  ;;  %3404 = vperm.xlu1 %4892, %v3246_v28  }
  0xde   : > { %v2493_v32 = vsel %vm2446_vm4, %v2488_v51, %v2492_v35 }
  0xdf   : > { %4374 = vmatmul.mubr.msk.bf16.gmra.mrb[28].mxu1 %vm673_vm2, %v1151_v39  ;;  %v2507_v39 = vshrl.u32 %v5432_v16, 16 }
  0xe0   : > { %4379 = vmatprep.mubr.msk.bf16.mxu1 %vm673_vm2, %v5670_v6  ;;  %v2489_v6 = vsel %vm2446_vm4, %v2484_v40, %v2488_v51  ;;  %v2497_v40 = vsel %vm2446_vm4, %v2492_v35, %v2496_v9  ;;  %v2521_v51 = vrot.slane %v2519_v26, 3 }
  0xe1   : > { %4528 = vmatmul.mubr.msk.bf16.gmra.mrb[12].mxu0 %vm673_vm2, %v2481_v43  ;;  %v2509_v1 = vrot.slane %v2507_v39, 2  ;;  %v2784_v39 = vrot.slane %v5246_v47, 3  ;;  %v2788_v47 = vrot.slane %v5305_v18, 3  ;;  %v2790_v18 = vrot.slane %v5331_v38, 3 }
  0xe2   : > { %4531 = vmatprep.mubr.msk.bf16.mxu0 %vm673_vm2, %v2485_v31  ;;  %v2516_v31 = vshrl.u32 %v5721_v48, 16 }
  0xe4   : > { %v2518_v28 = vrot.slane %v2516_v31, 2  ;;  %v2791_v31 = vsel %vm2774_vm6, %v2788_v47, %v2790_v18 }
  0xe7   : > { %4380 = vmatmul.mubr.msk.bf16.vlgmr.msra.gmra.mrb[0].mxu1 %vm673_vm2, %v5674_v61  ;;  %v2499_v61 = vrot.slane %v5458_v45, 3  ;;  %v1691_v45 = vshll.u32 %v5597_v19, 16 }
  0xe8   : > { %4582 = vmatpush3.bf16.msra.mxu1 %v4923_v62  ;;  %4383 = vmatprep.mubr.msk.bf16.mxu1 %vm673_vm2, %v5691_v29  ;;  %v2510_v29 = vshll.u32 %v5432_v16, 16  ;;  %v4925_v62 = vld [vmem:[%s5169_s29 + $0x18] sm:$0xff]  }
  0xe9   : > { %4532 = vmatmul.mubr.msk.bf16.gmra.mrb[16].mxu0 %vm673_vm2, %v2489_v6  ;;  %v2500_v13 = vor.u32 %v2499_v61, %v2498_v23  ;;  %v2522_v6 = vor.u32 %v2521_v51, %v2518_v28  ;;  %v4926_v23 = vld [vmem:[%s5169_s29 + $0x20] sm:$0xff]   ;;  %v1670_v28 = vrot.slane %v5455_v54, 1  ;;  %v1671_v51 = vrot.slane %v5441_v24, 2  ;;  %s6009_s29 = sand.u32 1, %s5041_s22  }
  0xea   : > { %4535 = vmatprep.mubr.msk.bf16.mxu0 %vm673_vm2, %v2493_v32  ;;  %v2512_v41 = vrot.slane %v2510_v29, 3  ;;  %v2776_v32 = vrot.slane %v4925_v62, 3  ;;  %v2778_v61 = vrot.slane %v4926_v23, 3  ;;  %v1654_v29 = vrot.slane %v5357_v63, 1  ;;  %s3748_s19 = sshll.u32 %s6009_s29, 7  ;;  %s3548_s14 = scalar_lea.sflag [#allocation3], %s6009_s29 }
  0xeb   : > { %v2501_v43 = vsel %vm2446_vm4, %v2496_v9, %v2500_v13  ;;  %v2780_v9 = vrot.slane %v5206_v27, 3  ;;  %v2792_v63 = vrot.slane %v5343_v53, 3  ;;  %v2800_v24 = vrot.slane %v5417_v3, 3  ;;  %s6018_s20 = scalar_lea.vmem [#allocation2], %s3748_s19 }
  0xec   : > { %v2513_v46 = vor.u32 %v2512_v41, %v2509_v1  ;;  %v1662_v41 = vrot.slane %v6221_v17, 1  ;;  %v2796_v17 = vrot.slane %v5373_v15, 3  ;;  %v1672_v15 = vor.u32 %v1671_v51, %v1670_v28  ;;  %s3571_s9 = sshll.u32 %s6018_s20, 4  ;;  %s6075_s9 = int_to_ptr.vmem [resolvable:$true] %s3571_s9 }
  0xed   : > { %v2793_v38 = vsel %vm2774_vm6, %v2790_v18, %v2792_v63  ;;  %v1681_v62 = vrot.slane %v1679_v25, 1  ;;  %v2802_v25 = vrot.slane %v6224_v5, 3  ;;  %v2804_v23 = vrot.slane %v5432_v16, 3  ;;  %s4927_s15 = scalar_lea.vmem %s6075_s9, 2048  ;;  %p4934_p2 = scmp.lt.s32.totalorder %s6075_s9, %s4932_s17 }
  0xee   : > { %p4928_p13 = scmp.ne.s32.totalorder %s6075_s9, %s4927_s15  ;;  %p4935_p3 = scmp.lt.s32.totalorder %s4933_s11, %s4927_s15 }
  0xef   : > { %4384 = vmatmul.mubr.msk.bf16.gmra.mrb[4].mxu1 %vm673_vm2, %v5695_v0  ;;  %v2504_v0 = vor.u32 %v2503_v14, %v2502_v60 }
  0xf0   : > { %4387 = vmatprep.mubr.msk.bf16.mxu1 %vm673_vm2, %v5711_v11  ;;  %p4929_p0 = pnand %p4928_p13, %p5132_p5  ;;  %p4936_p4 = por %p4935_p3, %p4934_p2 }
  0xf1   : > { %4536 = vmatmul.mubr.msk.bf16.gmra.mrb[20].mxu0 %vm673_vm2, %v2497_v40  ;;  %v2505_v11 = vsel %vm2446_vm4, %v2500_v13, %v2504_v0  ;;  %v2514_v35 = vsel %vm2446_vm4, %v2504_v0, %v2513_v46  ;;  %v2782_v13 = vrot.slane %v5218_v36, 3  ;;  %v2786_v36 = vrot.slane %v5274_v59, 3 }
  0xf2   : > { %4539 = vmatprep.mubr.msk.bf16.mxu0 %vm673_vm2, %v2501_v43  ;;  %v1655_v40 = vrot.slane %v5350_v55, 2  ;;  %v1408_v59 = vrot.slane %v5597_v19, 1  ;;  %v6225_v43 = vld [vmem:[#allocation9_spill] sm:$0xff]  ;;  %v1663_v0 = vrot.slane %v6222_v33, 2  ;;  %v1666_v33 = vrot.slane %v5429_v10, 1  ;;  %p4930_p1 = pneg %p4929_p0 }
  0xf3   : > { %v2783_v27 = vsel %vm2774_vm6, %v2780_v9, %v2782_v13  ;;  %v2789_v60 = vsel %vm2774_vm6, %v2786_v36, %v2788_v47  ;;  %v2798_v10 = vrot.slane %v5401_v44, 3 }
  0xf4   : > { %v1656_v14 = vor.u32 %v1655_v40, %v1654_v29  ;;  %v1664_v26 = vor.u32 %v1663_v0, %v1662_v41  ;;  %p4937_p7 = pnand %p4936_p4, %p4930_p1 }
  0xf5   : > { %v2799_v44 = vsel %vm2774_vm6, %v2796_v17, %v2798_v10  ;;  %v2801_v3 = vsel %vm2774_vm6, %v2798_v10, %v2800_v24 }
  0xf6   : > { %v1657_v1 = vsel %vm1618_vm1, %v6225_v43, %v1656_v14 }
  0xf7   : > { %4388 = vmatmul.mubr.msk.bf16.gmra.mrb[8].mxu1 %vm673_vm2, %v5715_v37  ;;  %v2523_v37 = vsel %vm2446_vm4, %v2513_v46, %v2522_v6  ;;  %v1667_v46 = vrot.slane %v6223_v22, 2  ;;  %v1674_v22 = vrot.slane %v5504_v21, 1  ;;  %v1688_v21 = vshrl.u32 %v5597_v19, 16 }
  0xf8   : > { %4391 = vmatprep.mubr.msk.bf16.mxu1 %vm673_vm2, %v5735_v8  ;;  %v2777_v8 = vsel %vm2774_vm6, %v2775_v56, %v2776_v32  ;;  %v2805_v19 = vsel %vm2774_vm6, %v2802_v25, %v2804_v23 }
  0xf9   : > { %4540 = vmatmul.mubr.msk.bf16.gmra.mrb[24].mxu0 %vm673_vm2, %v2505_v11  ;;  %v1668_v6 = vor.u32 %v1667_v46, %v1666_v33 }
  0xfa   : > { %4543 = vmatprep.mubr.msk.bf16.mxu0 %vm673_vm2, %v2514_v35 }
  0xfb   : > { %v1669_v54 = vsel %vm1618_vm1, %v1664_v26, %v1668_v6  ;;  %v1673_v56 = vsel %vm1618_vm1, %v1668_v6, %v1672_v15 }
  0xff   : > { %4392 = vmatmul.mubr.msk.bf16.gmra.mrb[12].mxu1 %vm673_vm2, %v5739_v4  ;;  %v2779_v4 = vsel %vm2774_vm6, %v2776_v32, %v2778_v61  ;;  %v1684_v32 = vrot.slane %v1682_v57, 2 }
 0x100   : > { %4395 = vmatprep.mubr.msk.bf16.mxu1 %vm673_vm2, %v5757_v49  ;;  %v2781_v49 = vsel %vm2774_vm6, %v2778_v61, %v2780_v9  ;;  %v1690_v61 = vrot.slane %v1688_v21, 1  ;;  %v1693_v9 = vrot.slane %v1691_v45, 2 }
 0x101   : > { %4544 = vmatmul.mubr.msk.bf16.gmra.mrb[28].mxu0 %vm673_vm2, %v2523_v37  ;;  %v1676_v37 = vor.u32 %v1675_v52, %v1674_v22 }
 0x102   : > { %4549 = vmatprep.mubr.msk.bf16.mxu0 %vm673_vm2, %v2777_v8  ;;  %v1685_v8 = vor.u32 %v1684_v32, %v1681_v62 }
 0x103   : > { %v1677_v57 = vsel %vm1618_vm1, %v1672_v15, %v1676_v37 }
 0x107   : > { %4396 = vmatmul.mubr.msk.bf16.gmra.mrb[16].mxu1 %vm673_vm2, %v5761_v30  ;;  %v2785_v30 = vsel %vm2774_vm6, %v2782_v13, %v2784_v39  ;;  %v1694_v13 = vor.u32 %v1693_v9, %v1690_v61 }
 0x108   : > { %4399 = vmatprep.mubr.msk.bf16.mxu1 %vm673_vm2, %v5778_v50  ;;  %v1406_v50 = vrot.slane %v6224_v5, 1  ;;  %v2806_v5 = vrot.slane %v5721_v48, 3 }
 0x109   : > { %4550 = vmatmul.mubr.msk.bf16.vlgmr.msra.gmra.mrb[0].mxu0 %vm673_vm2, %v2779_v4  ;;  %v1686_v4 = vsel %vm1618_vm1, %v1676_v37, %v1685_v8  ;;  %v1695_v16 = vsel %vm1618_vm1, %v1685_v8, %v1694_v13 }
 0x10a   : > { %4553 = vmatprep.mubr.msk.bf16.mxu0 %vm673_vm2, %v2781_v49  ;;  %v1409_v55 = vsel %vm1118_vm5, %v1406_v50, %v1408_v59  ;;  %v2803_v49 = vsel %vm2774_vm6, %v2800_v24, %v2802_v25 }
 0x10b   : > { %v3250_v47 = vpop.permute.xlu0 %3249 }
 0x10f   : > { %4400 = vmatmul.mubr.msk.bf16.gmra.mrb[20].mxu1 %vm673_vm2, %v5781_v42  ;;  %v1407_v42 = vsel %vm1118_vm5, %v5791_v34, %v1406_v50  ;;  %v1658_v34 = vrot.slane %v5379_v20, 1  ;;  %v2794_v20 = vrot.slane %v5363_v2, 3  ;;  %v3255_v59 = vpop.permute.xlu0 %3254 }
 0x110   : > { %4403 = vmatprep.mubr.msk.bf16.mxu1 %vm673_vm2, %v5800_v58  ;;  %v2787_v58 = vsel %vm2774_vm6, %v2784_v39, %v2786_v36  ;;  %v2807_v39 = vsel %vm2774_vm6, %v2804_v23, %v2806_v5 }
 0x111   : > { %4554 = vmatmul.mubr.msk.bf16.gmra.mrb[4].mxu0 %vm673_vm2, %v2783_v27  ;;  %v2795_v35 = vsel %vm2774_vm6, %v2792_v63, %v2794_v20  ;;  %v2797_v2 = vsel %vm2774_vm6, %v2794_v20, %v2796_v17 }
 0x112   : > { %4557 = vmatprep.mubr.msk.bf16.mxu0 %vm673_vm2, %v2785_v30 }
 0x117   : > { %4404 = vmatmul.mubr.msk.bf16.gmra.mrb[24].mxu1 %vm673_vm2, %v5804_v7  ;;  %v1659_v7 = vrot.slane %v6220_v12, 2 }
 0x118   : > { %4407 = vmatprep.mubr.msk.bf16.mxu1 %vm673_vm2, %v1407_v42  ;;  %v3260_v42 = vpop.permute.xlu1 %3259 }
 0x119   : > { %4558 = vmatmul.mubr.msk.bf16.gmra.mrb[8].mxu0 %vm673_vm2, %v2787_v58  ;;  %v1660_v53 = vor.u32 %v1659_v7, %v1658_v34 }
 0x11a   : > { %4561 = vmatprep.mubr.msk.bf16.mxu0 %vm673_vm2, %v2789_v60 }
 0x11b   : > { %v1661_v12 = vsel %vm1618_vm1, %v1656_v14, %v1660_v53  ;;  %v1665_v11 = vsel %vm1618_vm1, %v1660_v53, %v1664_v26 }
 0x11c   : > { %v3265_v48 = vpop.permute.xlu1 %3264 }
 0x11f   : > { %4408 = vmatmul.mubr.msk.bf16.gmra.mrb[28].mxu1 %vm673_vm2, %v1409_v55  ;;  %v3270_v55 = vpop.permute.xlu0 %3269 }
 0x120   : > { %4429 = vmatprep.mubr.msk.bf16.mxu1 %vm673_vm2, %v1657_v1  ;;  %v3275_v7 = vpop.permute.xlu1 %3274 }
 0x121   : > { %4562 = vmatmul.mubr.msk.bf16.gmra.mrb[12].mxu0 %vm673_vm2, %v2791_v31 }
 0x122   : > { %4565 = vmatprep.mubr.msk.bf16.mxu0 %vm673_vm2, %v2793_v38 }
 0x124   : > { %v3285_v0 = vpop.permute.xlu1 %3284 }
 0x127   : > { %4430 = vmatmul.mubr.msk.bf16.vlgmr.msra.gmra.mrb[16].mxu1 %vm673_vm2, %v1661_v12 }
 0x128   : > { %4433 = vmatprep.mubr.msk.bf16.mxu1 %vm673_vm2, %v1665_v11  ;;  %v6006_v26 = vpop.permute.xlu1 %3294 }
 0x129   : > { %4566 = vmatmul.mubr.msk.bf16.gmra.mrb[16].mxu0 %vm673_vm2, %v2795_v35  ;;  %v3280_v43 = vpop.permute.xlu0 %3279 }
 0x12a   : > { %4569 = vmatprep.mubr.msk.bf16.mxu0 %vm673_vm2, %v2797_v2 }
 0x12c   : > { %v6014_v28 = vpop.permute.xlu1 %3304 }
 0x12d   : > { %v6004_v53 = vpop.permute.xlu0 %3289 }
 0x12f   : > { %4434 = vmatmul.mubr.msk.bf16.gmra.mrb[20].mxu1 %vm673_vm2, %v1669_v54 }
 0x130   : > { %4437 = vmatprep.mubr.msk.bf16.mxu1 %vm673_vm2, %v1673_v56 }
 0x131   : > { %4570 = vmatmul.mubr.msk.bf16.gmra.mrb[20].mxu0 %vm673_vm2, %v2799_v44  ;;  %v6011_v12 = vpop.permute.xlu0 %3299 }
 0x132   : > { %4573 = vmatprep.mubr.msk.bf16.mxu0 %vm673_vm2, %v2801_v3  ;;  %v6022_v3 = vpop.permute.xlu1 %3314 }
 0x135   : > { %v6016_v22 = vpop.permute.xlu0 %3309 }
 0x137   : > { %4438 = vmatmul.mubr.msk.bf16.gmra.mrb[24].mxu1 %vm673_vm2, %v1677_v57 }
 0x138   : > { %4441 = vmatprep.mubr.msk.bf16.mxu1 %vm673_vm2, %v1686_v4 }
 0x139   : > { %4574 = vmatmul.mubr.msk.bf16.gmra.mrb[24].mxu0 %vm673_vm2, %v2803_v49 }
 0x13a   : > { %4577 = vmatprep.mubr.msk.bf16.mxu0 %vm673_vm2, %v2805_v19 }
 0x13f   : > { %4442 = vmatmul.mubr.msk.bf16.gmra.mrb[28].mxu1 %vm673_vm2, %v1695_v16  ;;  %v6024_v16 = vpop.permute.xlu0 %3319 }
 0x141   : > { %4578 = vmatmul.mubr.msk.bf16.gmra.mrb[28].mxu0 %vm673_vm2, %v2807_v39 }
 0x1ba   : > { %v4381_v27 = vpop.f32.mrb[0].mxu1 }
 0x1bb   : > { %v1456_v30 = vpop.f32.mrb[1].mxu1 }
 0x1bc   : > { %v4382_v50 = vpop.f32.mrb[2].mxu1 }
 0x1bd   : > { %v1459_v36 = vpop.f32.mrb[3].mxu1 }
 0x1c2   : > { %v4385_v29 = vpop.f32.mrb[4].mxu1 }
 0x1c3   : > { %v1472_v40 = vpop.f32.mrb[5].mxu1 }
 0x1c4   : > { %v4386_v58 = vpop.f32.mrb[6].mxu1 }
 0x1c5   : > { %v1475_v60 = vpop.f32.mrb[7].mxu1 }
 0x1ca   : > { %v5988_v14 = vpop.f32.mrb[8].mxu1 }
 0x1cb   : > { %v5990_v18 = vpop.f32.mrb[9].mxu1 }
 0x1cc   : > { %v5992_v63 = vpop.f32.mrb[10].mxu1 }
 0x1cd   : > { %v5994_v34 = vpop.f32.mrb[11].mxu1 }
 0x1d2   : > { %v5996_v1 = vpop.f32.mrb[12].mxu1 }
 0x1d3   : > { %v5998_v41 = vpop.f32.mrb[13].mxu1 }
 0x1d4   : > { %v6000_v31 = vpop.f32.mrb[14].mxu1 }
 0x1d5   : > { %v6002_v38 = vpop.f32.mrb[15].mxu1 }
 0x1dc   : > { %v4551_v20 = vpop.f32.mrb[0].mxu0 }
 0x1dd   : > { %v4583_v17 = vadd.f32 %v4551_v20, %v4381_v27  ;;  %v2896_v33 = vpop.f32.mrb[1].mxu0 }
 0x1de   : > { %v4584_v46 = vadd.f32 %v2896_v33, %v1456_v30  ;;  %v4552_v11 = vpop.f32.mrb[2].mxu0 }
 0x1df   : > { %v4585_v51 = vadd.f32 %v4552_v11, %v4382_v50  ;;  %v2899_v35 = vpop.f32.mrb[3].mxu0  ;;  %v3409_v10 = vmul.f32 %v4583_v17, %v3260_v42 }
 0x1e0   : > { %v3407_v2 = vmul.f32 %v4584_v46, %v3250_v47  ;;  %v4586_v6 = vadd.f32 %v2899_v35, %v1459_v36  ;;  %v6026_v47 = vpop.permute.xlu1 %3324 }
 0x1e1   : > { %v4035_v15 = vpack.c.bf16 %v4585_v51, %v4583_v17  ;;  %v3410_v52 = vmul.f32 %v4585_v51, %v3265_v48  ;;  %v3478_v45 = vmul.f32 %v4583_v17, %v3409_v10 }
 0x1e2   : > { %v4030_v54 = vpack.c.bf16 %v4586_v6, %v4584_v46  ;;  %v3408_v24 = vmul.f32 %v4586_v6, %v3255_v59  ;;  %v3476_v56 = vmul.f32 %v4584_v46, %v3407_v2  ;;  %v6032_v46 = vpop.permute.xlu0 %3329 }
 0x1e3   : > { %4107 = vst [vmem:[%s6018_s20 + $0x8] sm:$0xff] %v4035_v15   ;;  %v3479_v61 = vmul.f32 %v4585_v51, %v3410_v52 }
 0x1e4   : > { %4031 = vst [vmem:[%s6018_s20] sm:$0xff] %v4030_v54   ;;  %v3439_v62 = vadd.f32 %v3408_v24, %v3407_v2  ;;  %v3477_v32 = vmul.f32 %v4586_v6, %v3408_v24  ;;  %v4555_v44 = vpop.f32.mrb[4].mxu0  ;;  %v6037_v6 = vpop.permute.xlu1 %3334 }
 0x1e5   : > { %v4587_v37 = vadd.f32 %v4555_v44, %v4385_v29  ;;  %v2912_v21 = vpop.f32.mrb[5].mxu0 }
 0x1e6   : > { %v3440_v8 = vadd.f32 %v3439_v62, %v3409_v10  ;;  %v3508_v25 = vadd.f32 %v3477_v32, %v3476_v56  ;;  %v4588_v57 = vadd.f32 %v2912_v21, %v1472_v40  ;;  %v4556_v23 = vpop.f32.mrb[6].mxu0  ;;  %v3340_v44 = vpop.permute.xlu0 %3339 }
 0x1e7   : > { %v4589_v9 = vadd.f32 %v4556_v23, %v4386_v58  ;;  %v2915_v4 = vpop.f32.mrb[7].mxu0  ;;  %v3413_v42 = vmul.f32 %v4587_v37, %v3280_v43 }
 0x1e8   : > { %v3509_v49 = vadd.f32 %v3508_v25, %v3478_v45  ;;  %v3411_v19 = vmul.f32 %v4588_v57, %v3270_v55  ;;  %v3441_v13 = vadd.f32 %v3440_v8, %v3410_v52  ;;  %v4590_v5 = vadd.f32 %v2915_v4, %v1475_v60 }
 0x1e9   : > { %v4045_v39 = vpack.c.bf16 %v4589_v9, %v4587_v37  ;;  %v3414_v59 = vmul.f32 %v4589_v9, %v3285_v0  ;;  %v3482_v11 = vmul.f32 %v4587_v37, %v3413_v42 }
 0x1ea   : > { %v3442_v27 = vadd.f32 %v3441_v13, %v3411_v19  ;;  %v3480_v30 = vmul.f32 %v4588_v57, %v3411_v19  ;;  %v3510_v50 = vadd.f32 %v3509_v49, %v3479_v61  ;;  %v4040_v36 = vpack.c.bf16 %v4590_v5, %v4588_v57 }
 0x1eb   : > { %4109 = vst [vmem:[%s6018_s20 + $0x18] sm:$0xff] %v4045_v39   ;;  %v3412_v29 = vmul.f32 %v4590_v5, %v3275_v7 }
 0x1ec   : > { %v3511_v40 = vadd.f32 %v3510_v50, %v3480_v30  ;;  %4108 = vst [vmem:[%s6018_s20 + $0x10] sm:$0xff] %v4040_v36   ;;  %v4559_v58 = vpop.f32.mrb[8].mxu0  ;;  %v3350_v36 = vpop.permute.xlu0 %3349 }
 0x1ed   : > { %v3443_v48 = vadd.f32 %v3442_v27, %v3412_v29  ;;  %v3481_v55 = vmul.f32 %v4590_v5, %v3412_v29  ;;  %v4591_v60 = vadd.f32 %v4559_v58, %v5988_v14  ;;  %v2928_v20 = vpop.f32.mrb[9].mxu0  ;;  %v3483_v14 = vmul.f32 %v4589_v9, %v3414_v59 }
 0x1ee   : > { %v4592_v17 = vadd.f32 %v2928_v20, %v5990_v18  ;;  %v4560_v33 = vpop.f32.mrb[10].mxu0 }
 0x1ef   : > { %v3444_v51 = vadd.f32 %v3443_v48, %v3413_v42  ;;  %v3512_v35 = vadd.f32 %v3511_v40, %v3481_v55  ;;  %v4593_v7 = vadd.f32 %v4560_v33, %v5992_v63  ;;  %v2931_v43 = vpop.f32.mrb[11].mxu0  ;;  %v3417_v56 = vmul.f32 %v4591_v60, %v6011_v12 }
 0x1f0   : > { %v3415_v0 = vmul.f32 %v4592_v17, %v6004_v53  ;;  %v4594_v2 = vadd.f32 %v2931_v43, %v5994_v34 }
 0x1f1   : > { %v3513_v15 = vadd.f32 %v3512_v35, %v3482_v11  ;;  %v3445_v18 = vadd.f32 %v3444_v51, %v3414_v59  ;;  %v4055_v10 = vpack.c.bf16 %v4593_v7, %v4591_v60  ;;  %v3418_v37 = vmul.f32 %v4593_v7, %v6014_v28 }
 0x1f2   : > { %v3484_v54 = vmul.f32 %v4592_v17, %v3415_v0  ;;  %v4050_v24 = vpack.c.bf16 %v4594_v2, %v4592_v17  ;;  %v3416_v52 = vmul.f32 %v4594_v2, %v6006_v26  ;;  %v6046_v26 = vpop.permute.xlu1 %3344  ;;  %v3486_v12 = vmul.f32 %v4591_v60, %v3417_v56 }
 0x1f3   : > { %v3446_v62 = vadd.f32 %v3445_v18, %v3415_v0  ;;  %v3514_v63 = vadd.f32 %v3513_v15, %v3483_v14  ;;  %4111 = vst [vmem:[%s6018_s20 + $0x28] sm:$0xff] %v4055_v10   ;;  %v3487_v19 = vmul.f32 %v4593_v7, %v3418_v37 }
 0x1f4   : > { %4110 = vst [vmem:[%s6018_s20 + $0x20] sm:$0xff] %v4050_v24   ;;  %v3485_v32 = vmul.f32 %v4594_v2, %v3416_v52  ;;  %v4563_v53 = vpop.f32.mrb[12].mxu0  ;;  %v3360_v2 = vpop.permute.xlu0 %3359 }
 0x1f5   : > { %v3515_v34 = vadd.f32 %v3514_v63, %v3484_v54  ;;  %v3447_v21 = vadd.f32 %v3446_v62, %v3416_v52  ;;  %v4595_v45 = vadd.f32 %v4563_v53, %v5996_v1  ;;  %v2944_v8 = vpop.f32.mrb[13].mxu0 }
 0x1f6   : > { %v4596_v25 = vadd.f32 %v2944_v8, %v5998_v41  ;;  %v4564_v57 = vpop.f32.mrb[14].mxu0  ;;  %v3355_v59 = vpop.permute.xlu1 %3354 }
 0x1f7   : > { %v3448_v23 = vadd.f32 %v3447_v21, %v3417_v56  ;;  %v3516_v61 = vadd.f32 %v3515_v34, %v3485_v32  ;;  %v4597_v9 = vadd.f32 %v4564_v57, %v6000_v31  ;;  %v2947_v4 = vpop.f32.mrb[15].mxu0  ;;  %v3421_v31 = vmul.f32 %v4595_v45, %v6024_v16 }
 0x1f8   : > { %v3419_v49 = vmul.f32 %v4596_v25, %v6016_v22  ;;  %v4598_v28 = vadd.f32 %v2947_v4, %v6002_v38 }
 0x1f9   : > { %v3517_v1 = vadd.f32 %v3516_v61, %v3486_v12  ;;  %v3449_v13 = vadd.f32 %v3448_v23, %v3418_v37  ;;  %v4065_v5 = vpack.c.bf16 %v4597_v9, %v4595_v45  ;;  %v3422_v55 = vmul.f32 %v4597_v9, %v6026_v47 }
 0x1fa   : > { %v4431_v41 = vpop.f32.mrb[16].mxu1  ;;  %v3488_v39 = vmul.f32 %v4596_v25, %v3419_v49  ;;  %v4060_v27 = vpack.c.bf16 %v4598_v28, %v4596_v25  ;;  %v3420_v30 = vmul.f32 %v4598_v28, %v6022_v3  ;;  %v3490_v11 = vmul.f32 %v4595_v45, %v3421_v31  ;;  %v3365_v62 = vpop.permute.xlu1 %3364 }
 0x1fb   : > { %v1848_v50 = vpop.f32.mrb[17].mxu1  ;;  %v3450_v42 = vadd.f32 %v3449_v13, %v3419_v49  ;;  %v3518_v29 = vadd.f32 %v3517_v1, %v3487_v19  ;;  %4113 = vst [vmem:[%s6018_s20 + $0x38] sm:$0xff] %v4065_v5   ;;  %v3491_v14 = vmul.f32 %v4597_v9, %v3422_v55 }
 0x1fc   : > { %v4432_v22 = vpop.f32.mrb[18].mxu1  ;;  %4112 = vst [vmem:[%s6018_s20 + $0x30] sm:$0xff] %v4060_v27   ;;  %v3489_v38 = vmul.f32 %v4598_v28, %v3420_v30  ;;  %v4567_v40 = vpop.f32.mrb[16].mxu0 }
 0x1fd   : > { %v1851_v58 = vpop.f32.mrb[19].mxu1  ;;  %v3519_v48 = vadd.f32 %v3518_v29, %v3488_v39  ;;  %v3451_v60 = vadd.f32 %v3450_v42, %v3420_v30  ;;  %v4599_v20 = vadd.f32 %v4567_v40, %v4431_v41  ;;  %v2960_v17 = vpop.f32.mrb[17].mxu0 }
 0x1fe   : > { %v4600_v3 = vadd.f32 %v2960_v17, %v1848_v50  ;;  %v4568_v33 = vpop.f32.mrb[18].mxu0  ;;  %v3375_v27 = vpop.permute.xlu1 %3374 }
 0x1ff   : > { %v3452_v51 = vadd.f32 %v3451_v60, %v3421_v31  ;;  %v3520_v16 = vadd.f32 %v3519_v48, %v3489_v38  ;;  %v4601_v35 = vadd.f32 %v4568_v33, %v4432_v22  ;;  %v2963_v7 = vpop.f32.mrb[19].mxu0  ;;  %v3425_v63 = vmul.f32 %v4599_v20, %v3340_v44 }
 0x200   : > { %v3423_v43 = vmul.f32 %v4600_v3, %v6032_v46  ;;  %v4602_v0 = vadd.f32 %v2963_v7, %v1851_v58 }
 0x201   : > { %v3521_v15 = vadd.f32 %v3520_v16, %v3490_v11  ;;  %v3453_v18 = vadd.f32 %v3452_v51, %v3422_v55  ;;  %v4075_v47 = vpack.c.bf16 %v4601_v35, %v4599_v20  ;;  %v3426_v8 = vmul.f32 %v4601_v35, %v6046_v26 }
 0x202   : > { %v4435_v10 = vpop.f32.mrb[20].mxu1  ;;  %v3492_v54 = vmul.f32 %v4600_v3, %v3423_v43  ;;  %v4070_v24 = vpack.c.bf16 %v4602_v0, %v4600_v3  ;;  %v3424_v52 = vmul.f32 %v4602_v0, %v6037_v6  ;;  %v3370_v6 = vpop.permute.xlu0 %3369  ;;  %v3494_v9 = vmul.f32 %v4599_v20, %v3425_v63 }
 0x203   : > { %v1864_v56 = vpop.f32.mrb[21].mxu1  ;;  %v3454_v32 = vadd.f32 %v3453_v18, %v3423_v43  ;;  %v3522_v53 = vadd.f32 %v3521_v15, %v3491_v14  ;;  %4115 = vst [vmem:[%s6018_s20 + $0x48] sm:$0xff] %v4075_v47   ;;  %v3495_v13 = vmul.f32 %v4601_v35, %v3426_v8 }
 0x204   : > { %v4436_v46 = vpop.f32.mrb[22].mxu1  ;;  %4114 = vst [vmem:[%s6018_s20 + $0x40] sm:$0xff] %v4070_v24   ;;  %v3493_v34 = vmul.f32 %v4602_v0, %v3424_v52  ;;  %v4571_v37 = vpop.f32.mrb[20].mxu0 }
 0x205   : > { %v1867_v21 = vpop.f32.mrb[23].mxu1  ;;  %v3523_v45 = vadd.f32 %v3522_v53, %v3492_v54  ;;  %v3455_v25 = vadd.f32 %v3454_v32, %v3424_v52  ;;  %v4603_v57 = vadd.f32 %v4571_v37, %v4435_v10  ;;  %v2976_v12 = vpop.f32.mrb[21].mxu0 }
 0x206   : > { %v4604_v23 = vadd.f32 %v2976_v12, %v1864_v56  ;;  %v4572_v61 = vpop.f32.mrb[22].mxu0  ;;  %v3380_v55 = vpop.permute.xlu0 %3379 }
 0x207   : > { %v3456_v4 = vadd.f32 %v3455_v25, %v3425_v63  ;;  %v3524_v44 = vadd.f32 %v3523_v45, %v3493_v34  ;;  %v4605_v49 = vadd.f32 %v4572_v61, %v4436_v46  ;;  %v2979_v28 = vpop.f32.mrb[23].mxu0  ;;  %v3429_v29 = vmul.f32 %v4603_v57, %v3360_v2  ;;  %v3385_v0 = vpop.permute.xlu1 %3384 }
 0x208   : > { %v3427_v19 = vmul.f32 %v4604_v23, %v3350_v36  ;;  %v4606_v1 = vadd.f32 %v2979_v28, %v1867_v21 }
 0x209   : > { %v3525_v5 = vadd.f32 %v3524_v44, %v3494_v9  ;;  %v3457_v41 = vadd.f32 %v3456_v4, %v3426_v8  ;;  %v4085_v39 = vpack.c.bf16 %v4605_v49, %v4603_v57  ;;  %v3430_v20 = vmul.f32 %v4605_v49, %v3365_v62 }
 0x20a   : > { %v4439_v26 = vpop.f32.mrb[24].mxu1  ;;  %v3496_v30 = vmul.f32 %v4604_v23, %v3427_v19  ;;  %v4080_v50 = vpack.c.bf16 %v4606_v1, %v4604_v23  ;;  %v3428_v31 = vmul.f32 %v4606_v1, %v3355_v59  ;;  %v3498_v16 = vmul.f32 %v4603_v57, %v3429_v29  ;;  %v3390_v63 = vpop.permute.xlu0 %3389 }
 0x20b   : > { %v1880_v42 = vpop.f32.mrb[25].mxu1  ;;  %v3458_v22 = vadd.f32 %v3457_v41, %v3427_v19  ;;  %v3526_v38 = vadd.f32 %v3525_v5, %v3495_v13  ;;  %4117 = vst [vmem:[%s6018_s20 + $0x58] sm:$0xff] %v4085_v39   ;;  %v3499_v15 = vmul.f32 %v4605_v49, %v3430_v20  ;;  %v3395_v61 = vpop.permute.xlu1 %3394 }
 0x20c   : > { %v4440_v40 = vpop.f32.mrb[26].mxu1  ;;  %4116 = vst [vmem:[%s6018_s20 + $0x50] sm:$0xff] %v4080_v50   ;;  %v3497_v58 = vmul.f32 %v4606_v1, %v3428_v31  ;;  %v4575_v36 = vpop.f32.mrb[24].mxu0 }
 0x20d   : > { %v1883_v48 = vpop.f32.mrb[27].mxu1  ;;  %v3527_v60 = vadd.f32 %v3526_v38, %v3496_v30  ;;  %v3459_v17 = vadd.f32 %v3458_v22, %v3428_v31  ;;  %v4607_v3 = vadd.f32 %v4575_v36, %v4439_v26  ;;  %v2992_v33 = vpop.f32.mrb[25].mxu0 }
 0x20e   : > { %v4608_v11 = vadd.f32 %v2992_v33, %v1880_v42  ;;  %v4576_v51 = vpop.f32.mrb[26].mxu0 }
 0x20f   : > { %v3460_v59 = vadd.f32 %v3459_v17, %v3429_v29  ;;  %v3528_v35 = vadd.f32 %v3527_v60, %v3497_v58  ;;  %v4609_v7 = vadd.f32 %v4576_v51, %v4440_v40  ;;  %v2995_v43 = vpop.f32.mrb[27].mxu0  ;;  %v3433_v32 = vmul.f32 %v4607_v3, %v3380_v55  ;;  %v3405_v38 = vpop.permute.xlu1 %3404 }
 0x210   : > { %v3431_v2 = vmul.f32 %v4608_v11, %v3370_v6  ;;  %v4610_v14 = vadd.f32 %v2995_v43, %v1883_v48 }
 0x211   : > { %v3529_v18 = vadd.f32 %v3528_v35, %v3498_v16  ;;  %v3461_v47 = vadd.f32 %v3460_v59, %v3430_v20  ;;  %v4095_v10 = vpack.c.bf16 %v4609_v7, %v4607_v3  ;;  %v3434_v25 = vmul.f32 %v4609_v7, %v3385_v0 }
 0x212   : > { %v4443_v54 = vpop.f32.mrb[28].mxu1  ;;  %v3500_v24 = vmul.f32 %v4608_v11, %v3431_v2  ;;  %v4090_v52 = vpack.c.bf16 %v4610_v14, %v4608_v11  ;;  %v3432_v56 = vmul.f32 %v4610_v14, %v3375_v27  ;;  %v3502_v4 = vmul.f32 %v4607_v3, %v3433_v32  ;;  %v3400_v27 = vpop.permute.xlu0 %3399 }
 0x213   : > { %v1896_v62 = vpop.f32.mrb[29].mxu1  ;;  %v3462_v53 = vadd.f32 %v3461_v47, %v3431_v2  ;;  %v3530_v46 = vadd.f32 %v3529_v18, %v3499_v15  ;;  %4119 = vst [vmem:[%s6018_s20 + $0x68] sm:$0xff] %v4095_v10   ;;  %v3503_v5 = vmul.f32 %v4609_v7, %v3434_v25 }
 0x214   : > { %v4444_v34 = vpop.f32.mrb[30].mxu1  ;;  %4118 = vst [vmem:[%s6018_s20 + $0x60] sm:$0xff] %v4090_v52   ;;  %v3501_v37 = vmul.f32 %v4610_v14, %v3432_v56  ;;  %v4579_v21 = vpop.f32.mrb[28].mxu0 }
 0x215   : > { %v1899_v45 = vpop.f32.mrb[31].mxu1  ;;  %v3531_v8 = vadd.f32 %v3530_v46, %v3500_v24  ;;  %v3463_v57 = vadd.f32 %v3462_v53, %v3432_v56  ;;  %v6065_v12 = vadd.f32 %v4579_v21, %v4443_v54  ;;  %v3008_v23 = vpop.f32.mrb[29].mxu0 }
 0x216   : > { %v4612_v6 = vadd.f32 %v3008_v23, %v1896_v62  ;;  %v4580_v9 = vpop.f32.mrb[30].mxu0 }
 0x217   : > { %v3464_v44 = vadd.f32 %v3463_v57, %v3433_v32  ;;  %v3532_v49 = vadd.f32 %v3531_v8, %v3501_v37  ;;  %v4613_v28 = vadd.f32 %v4580_v9, %v4444_v34  ;;  %v3011_v19 = vpop.f32.mrb[31].mxu0  ;;  %v3437_v42 = vmul.f32 %v6065_v12, %v3400_v27 }
 0x218   : > { %v3435_v1 = vmul.f32 %v4612_v6, %v3390_v63  ;;  %v4614_v13 = vadd.f32 %v3011_v19, %v1899_v45 }
 0x219   : > { %v3533_v41 = vadd.f32 %v3532_v49, %v3502_v4  ;;  %v3465_v39 = vadd.f32 %v3464_v44, %v3434_v25  ;;  %v4105_v26 = vpack.c.bf16 %v4613_v28, %v6065_v12  ;;  %v3438_v36 = vmul.f32 %v4613_v28, %v3405_v38 }
 0x21a   : > { %v3504_v30 = vmul.f32 %v4612_v6, %v3435_v1  ;;  %v4100_v50 = vpack.c.bf16 %v4614_v13, %v4612_v6  ;;  %v3436_v31 = vmul.f32 %v4614_v13, %v3395_v61 }
 0x21b   : > { %v3466_v29 = vadd.f32 %v3465_v39, %v3435_v1  ;;  %v3534_v22 = vadd.f32 %v3533_v41, %v3503_v5  ;;  %4121 = vst [vmem:[%s6018_s20 + $0x78] sm:$0xff] %v4105_v26  }
 0x21c   : > { %4120 = vst [vmem:[%s6018_s20 + $0x70] sm:$0xff] %v4100_v50   ;;  %v3505_v40 = vmul.f32 %v4614_v13, %v3436_v31 }
 0x21d   : > { %v3535_v58 = vadd.f32 %v3534_v22, %v3504_v30  ;;  %v3467_v48 = vadd.f32 %v3466_v29, %v3436_v31 }
 0x21e   : > { %4940 = shalt.err (!%p4937_p7)
}
 0x21f   : > { %s4941_s18 = scalar_lea.hbm %s6073_s13, 2048  ;;  %s4945_s28 = scalar_lea.hbm %s6195_s4, 6144 }
 0x220   : > { %p4942_p8 = scmp.ne.s32.totalorder %s6073_s13, %s4941_s18  ;;  %p4946_p11 = scmp.lt.u32.totalorder %s6073_s13, %s6195_s4 }
 0x221   : > { %p4947_p12 = scmp.lt.u32.totalorder %s4945_s28, %s4941_s18  ;;  %p4949_p0 = scmp.lt.u32.totalorder %s4941_s18, %s6073_s13 }
 0x222   : > { %p4943_p9 = pnand %p4942_p8, %p5132_p5 }
 0x223   : > { %p4948_p13 = por %p4947_p12, %p4946_p11 }
 0x224   : > { %p4944_p10 = pneg %p4943_p9 }
 0x225   : > { %p4950_p1 = por %p4949_p0, %p4948_p13 }
 0x227   : > { %p4951_p2 = pnand %p4950_p1, %p4944_p10 }
 0x229   : > { %4954 = shalt.err (!%p4951_p2)
}
 0x22a   : > { %s5053_s15 = smov 64   ;;  %s5054_s16 = smov 4   ;;  %v3506_v55 = vmul.f32 %v6065_v12, %v3437_v42  ;;  %v3468_v60 = vadd.f32 %v3467_v48, %v3437_v42  ;;  %v3536_v20 = vadd.f32 %v3535_v58, %v3505_v40  ;;  %v3507_v17 = vmul.f32 %v4613_v28, %v3438_v36 }
 0x22b   : > { %4839 = dma.vmem_to_hbm [thread:$0]  (%p5132_p5), %s6075_s9, 2048, %s6073_s13, %s3548_s14, %s5053_s15, %s5053_s15, %s5054_s16  }
 0x22c   : > { %v3469_v3 = vadd.f32 %v3468_v60, %v3438_v36  ;;  %v3537_v33 = vadd.f32 %v3536_v20, %v3506_v55  ;;  %s3749_s17 = sshll.u32 %s6009_s29, 3  ;;  %s3552_s11 = sand.u32 1, %s5113_s25  }
 0x22d   : > { %s3985_s18 = sshll.u32 %s5113_s25, 7  ;;  %s293_s9 = scalar_lea.vmem [#allocation4], %s3749_s17 }
 0x22e   : > { %v3538_v11 = vadd.f32 %v3537_v33, %v3507_v17  ;;  %v3470_v51 = vrot.slane %v3469_v3, 4  ;;  %s3587_s13 = sshll.u32 %s293_s9, 4  ;;  %s6108_s14 = scalar_lea.vmem [#allocation6], %s3749_s17  ;;  %s6116_s13 = int_to_ptr.vmem [resolvable:$true] %s3587_s13 }
 0x22f   : > { %s3600_s19 = sshll.u32 %s6108_s14, 4  ;;  %s6114_s28 = scalar_lea.hbm %s6196_s5, %s3985_s18  ;;  %s6123_s19 = int_to_ptr.vmem [resolvable:$true] %s3600_s19 }
 0x230   : > { %v3539_v16 = vrot.slane %v3538_v11, 4  ;;  %v3471_v59 = vadd.f32 %v3470_v51, %v3469_v3  ;;  %s6121_s12 = scalar_lea.hbm %s6197_s6, %s3985_s18  ;;  %s6125_s15 = scalar_lea.sflag [#allocation5], %s3552_s11 }
 0x231   : > { %s4955_s16 = scalar_lea.vmem %s6116_s13, 128  ;;  %s5055_s17 = smov [#allocation4]  }
 0x232   : > { %v3472_v35 = vrot.slane %v3471_v59, 2  ;;  %v3540_v7 = vadd.f32 %v3539_v16, %v3538_v11  ;;  %p4956_p3 = scmp.ne.s32.totalorder %s6116_s13, %s4955_s16  ;;  %s4959_s20 = sshll.u32 %s5055_s17, 4  ;;  %s4960_s20 = int_to_ptr.vmem [resolvable:$false] %s4959_s20 }
 0x233   : > { %s4961_s29 = scalar_lea.vmem %s4960_s20, 256  ;;  %p4962_p8 = scmp.lt.s32.totalorder %s6116_s13, %s4960_s20 }
 0x234   : > { %v3473_v43 = vadd.f32 %v3472_v35, %v3471_v59  ;;  %v3541_v0 = vrot.slane %v3540_v7, 2  ;;  %p4957_p4 = pnand %p4956_p3, %p5132_p5  ;;  %p4963_p9 = scmp.lt.s32.totalorder %s4961_s29, %s4955_s16 }
 0x236   : > { %v3474_v2 = vrot.slane %v3473_v43, 1  ;;  %v3542_v14 = vadd.f32 %v3541_v0, %v3540_v7  ;;  %p4958_p7 = pneg %p4957_p4  ;;  %p4964_p10 = por %p4963_p9, %p4962_p8 }
 0x238   : > { %v3475_v15 = vadd.f32 %v3474_v2, %v3473_v43  ;;  %v3543_v18 = vrot.slane %v3542_v14, 1  ;;  %p4965_p11 = pnand %p4964_p10, %p4958_p7 }
 0x23a   : > { %3545 = vst [vmem:[%s293_s9] sm:$0xff] %v3475_v15  ;;  %v3544_v47 = vadd.f32 %v3543_v18, %v3542_v14 }
 0x23b   : > { %4968 = shalt.err (!%p4965_p11)
}
 0x23c   : > { %s4969_s11 = scalar_lea.hbm %s6114_s28, 128  ;;  %s4973_s25 = scalar_lea.hbm %s6196_s5, 384 }
 0x23d   : > { %p4970_p12 = scmp.ne.s32.totalorder %s6114_s28, %s4969_s11  ;;  %p4974_p1 = scmp.lt.u32.totalorder %s6114_s28, %s6196_s5 }
 0x23e   : > { %p4975_p2 = scmp.lt.u32.totalorder %s4973_s25, %s4969_s11  ;;  %p4977_p4 = scmp.lt.u32.totalorder %s4969_s11, %s6114_s28 }
 0x23f   : > { %p4971_p13 = pnand %p4970_p12, %p5132_p5 }
 0x240   : > { %p4976_p3 = por %p4975_p2, %p4974_p1 }
 0x241   : > { %p4972_p0 = pneg %p4971_p13 }
 0x242   : > { %p4978_p7 = por %p4977_p4, %p4976_p3 }
 0x244   : > { %p4979_p8 = pnand %p4978_p7, %p4972_p0 }
 0x246   : > { %4982 = shalt.err (!%p4979_p8)
}
 0x247   : > { %4840 = dma.vmem_to_hbm [thread:$0]  (%p5132_p5), %s6116_s13, 128, %s6114_s28, %s6125_s15   ;;  %3546 = vst [vmem:[%s6108_s14] sm:$0xff] %v3544_v47 }
 0x248   : > { %s4983_s16 = scalar_lea.vmem %s6123_s19, 128  ;;  %s5056_s20 = smov [#allocation6]  }
 0x249   : > { %p4984_p9 = scmp.ne.s32.totalorder %s6123_s19, %s4983_s16  ;;  %s4987_s29 = sshll.u32 %s5056_s20, 4  ;;  %s4988_s29 = int_to_ptr.vmem [resolvable:$false] %s4987_s29 }
 0x24a   : > { %s4989_s11 = scalar_lea.vmem %s4988_s29, 256  ;;  %p4990_p12 = scmp.lt.s32.totalorder %s6123_s19, %s4988_s29 }
 0x24b   : > { %p4985_p10 = pnand %p4984_p9, %p5132_p5  ;;  %p4991_p13 = scmp.lt.s32.totalorder %s4989_s11, %s4983_s16 }
 0x24d   : > { %p4986_p11 = pneg %p4985_p10  ;;  %p4992_p0 = por %p4991_p13, %p4990_p12 }
 0x24f   : > { %p4993_p1 = pnand %p4992_p0, %p4986_p11 }
 0x251   : > { %4996 = shalt.err (!%p4993_p1)
}
 0x252   : > { %s4997_s13 = scalar_lea.hbm %s6121_s12, 128  ;;  %s5001_s18 = scalar_lea.hbm %s6197_s6, 384 }
 0x253   : > { %p4998_p2 = scmp.ne.s32.totalorder %s6121_s12, %s4997_s13  ;;  %p5002_p7 = scmp.lt.u32.totalorder %s6121_s12, %s6197_s6 }
 0x254   : > { %p5003_p8 = scmp.lt.u32.totalorder %s5001_s18, %s4997_s13  ;;  %p5005_p10 = scmp.lt.u32.totalorder %s4997_s13, %s6121_s12 }
 0x255   : > { %p4999_p3 = pnand %p4998_p2, %p5132_p5 }
 0x256   : > { %p5004_p9 = por %p5003_p8, %p5002_p7 }
 0x257   : > { %p5000_p4 = pneg %p4999_p3 }
 0x258   : > { %p5006_p11 = por %p5005_p10, %p5004_p9 }
 0x25a   : > { %p5007_p12 = pnand %p5006_p11, %p5000_p4 }
 0x25c   : > { %5010 = shalt.err (!%p5007_p12)
}
 0x25d   : > { %4841 = dma.vmem_to_hbm [thread:$0]  (%p5132_p5), %s6123_s19, 128, %s6121_s12, %s6125_s15  }
 0x25e PF: > { %p4855_p13 = scmp.ge.s32.totalorder %s5049_s24, 2  ;;  %s3612_s10 = sand.u32 1, %s5037_s21  }
 0x25f   : > { %s3613_s17 = scalar_lea.sflag [#allocation3], %s3612_s10 }
 0x260   : > { %p4846_p0 = pnand %p4855_p13, %p5136_p6 }
 0x262   : > { %5028 = dma.done.wait (!%p4846_p0), %s3613_s17, 2048  }
 0x263   : > { %5030 = vsyncadd (!%p4846_p0), %s3613_s17, 4294965248  ;;  %s3621_s16 = sand.u32 1, %s3744_s26  }
 0x264   : > { %s3622_s20 = scalar_lea.sflag [#allocation5], %s3621_s16 }
 0x265   : > { %5032 = dma.done.wait (!%p4846_p0), %s3622_s20, 256  }
 0x266   : > { %5034 = vsyncadd (!%p4846_p0), %s3622_s20, 4294967040  ;;  %p20_p5 = scmp.ge.s32.totalorder %s5117_s27, 5   ;;  %s6226_s21 = smov %s5041_s22 }
 0x267   : > { %s6227_s22 = smov %s5045_s23  ;;  %s6228_s23 = smov %s5130_s30 }
 0x268   : > { %s6229_s24 = smov %s5117_s27  ;;  %22 = sbr.rel (!%p20_p5) target bundleno = 5 (0x5), region = 117 }
 0x26f   :  { %3636 = vsyncpa [#allocation3], 1 }
 0x270   :  { %3638 = vsyncpa [#allocation3 + $0x1], 1 }
 0x271   :  { %3639 = vsyncpa [#allocation5], 1 }
 0x272   :  { %3641 = vsyncpa [#allocation5 + $0x1], 1 }

</bundles_post_ra>
